<compile_context>
chip_gen: v7x
topology: tpu7x:2x2x1
jax: 0.10.0
libtpu: 0.0.40
codegen_flags: <defaults>
</compile_context>

<pallas_src>
import functools

import jax
import jax.numpy as jnp
from jax import lax
from jax.experimental import pallas as pl
from jax.experimental.pallas import tpu as pltpu

EPS = 1e-12


# ----------------------------------------------------------------------------
# Pallas kernel: the full ConvBlock1d layer stack for one (source, batch) tile
# ----------------------------------------------------------------------------
def conv_block_kernel(x_ref, w1_ref, b1_ref, gamma_ref, beta_ref, wc_ref, bc_ref,
                      out_ref, skip_ref, pad_ref,
                      *, L, K, C, skip_ch, hidden, T, pad_cols, eps, compute_dtype):
    x = x_ref[...]                                           # (C, T) f32, residual path
    skip = jnp.zeros((skip_ch, T), jnp.float32)              # running skip sum

    # Zero the halo once per grid point.  The centre [pad_cols:pad_cols+T] is fully
    # overwritten every layer; the halos are never written, so they stay zero.
    pad_ref[...] = jnp.zeros(pad_ref.shape, pad_ref.dtype)

    for l in range(L):                       # static unroll: dilations / shifts stay static
        dilation = 2 ** l                                    # dilated=True, stride=1
        pad_left = ((K - 1) * dilation) // 2

        # --- 1x1 generated conv + generated bias (MXU, f32 accumulate) ------------
        h = jnp.dot(w1_ref[l], x.astype(compute_dtype),
                    preferred_element_type=jnp.float32) + b1_ref[l]      # (hidden, T)

        # --- GroupNorm over the whole (hidden, T) group: two-pass, folded affine --
        mean = jnp.mean(h, keepdims=True)                    # (1, 1)
        cen = h - mean
        var = jnp.mean(cen * cen, keepdims=True)             # (1, 1) biased variance
        scale = gamma_ref[l] * lax.rsqrt(var + eps)          # (hidden, 1)
        shift = beta_ref[l] - mean * scale                   # (hidden, 1)
        # One lane-aligned full-width store of the normalized activations into the
        # zero-haloed scratch (pad_cols is a multiple of 128).
        pad_ref[:, pad_cols:pad_cols + T] = (h * scale + shift).astype(pad_ref.dtype)

        # --- dilated dual-head conv: K taps = lane-shifted loads from the haloed
        #     scratch, each feeding a (C+skip, hidden) @ (hidden, T) MXU matmul ----
        y = jnp.zeros((C + skip_ch, T), jnp.float32)
        for k in range(K):                                   # static
            sh = k * dilation - pad_left                     # static tap shift
            tap = pad_ref[:, pad_cols + sh:pad_cols + sh + T]   # zeros outside [0, T)
            y = y + jnp.dot(wc_ref[l * K + k], tap,
                            preferred_element_type=jnp.float32)
        y = y + bc_ref[l]                                    # (C+skip, T) generated bias

        x = y[:C] + x                                        # residual connection
        skip = skip + y[C:]                                  # skip accumulation

    out_ref[...] = x
    skip_ref[...] = skip


def _pick_vmem_limit(block_bytes):
    """Derive vmem_limit_bytes from the real per-grid-step footprint and the chip's
    VMEM capacity (v7x 64 MiB vs v5e/v6e 128 MiB) instead of a hard-coded constant."""
    try:
        cap = int(pltpu.get_tpu_info().vmem_capacity_bytes)
    except Exception:                       # no TPU visible / interpret mode
        cap = 64 * 1024 * 1024              # assume the smallest (v7x per-core) VMEM
    want = 3 * block_bytes + (4 << 20)      # double-buffered blocks + headroom
    return int(min(max(want, 16 << 20), (cap * 3) // 4))


def conv_block_pallas(x_s, W1, b1, gamma, beta, Wc, bc,
                      *, L, K, C, skip_ch, hidden, T, compute_dtype):
    S, B = x_s.shape[0], x_s.shape[1]
    max_pad = (K - 1) * (2 ** (L - 1))                       # largest dilation halo
    pad_cols = max(128, ((max_pad + 127) // 128) * 128)      # lane-aligned halo width

    kernel = functools.partial(
        conv_block_kernel, L=L, K=K, C=C, skip_ch=skip_ch, hidden=hidden, T=T,
        pad_cols=pad_cols, eps=EPS, compute_dtype=compute_dtype)

    itemsize = jnp.dtype(compute_dtype).itemsize
    block_bytes = ((2 * C + skip_ch) * T * 4                       # x, out, skip blocks
                   + L * hidden * C * itemsize                     # W1
                   + 3 * L * hidden * 4                            # b1, gamma, beta
                   + L * K * (C + skip_ch) * hidden * itemsize     # Wc
                   + L * (C + skip_ch) * 4                         # bc
                   + hidden * (T + 2 * pad_cols) * itemsize)       # haloed scratch

    flops = 2 * S * B * L * T * hidden * (C + K * (C + skip_ch))
    bytes_accessed = (S * B * (2 * C + skip_ch) * T * 4
                      + S * L * (hidden * C + K * (C + skip_ch) * hidden) * itemsize
                      + S * L * (3 * hidden + (C + skip_ch)) * 4)
    transcendentals = S * B * L                                     # one rsqrt per layer

    out, skip = pl.pallas_call(
        kernel,
        out_shape=(jax.ShapeDtypeStruct((S, B, C, T), jnp.float32),
                   jax.ShapeDtypeStruct((S, B, skip_ch, T), jnp.float32)),
        grid=(S, B),
        in_specs=[
            pl.BlockSpec((None, None, C, T), lambda s, b: (s, b, 0, 0)),            # x
            pl.BlockSpec((None, L, hidden, C), lambda s, b: (s, 0, 0, 0)),          # W1
            pl.BlockSpec((None, L, hidden, 1), lambda s, b: (s, 0, 0, 0)),          # b1
            pl.BlockSpec((None, L, hidden, 1), lambda s, b: (s, 0, 0, 0)),          # gamma
            pl.BlockSpec((None, L, hidden, 1), lambda s, b: (s, 0, 0, 0)),          # beta
            pl.BlockSpec((None, L * K, C + skip_ch, hidden),
                         lambda s, b: (s, 0, 0, 0)),                                # Wc
            pl.BlockSpec((None, L, C + skip_ch, 1), lambda s, b: (s, 0, 0, 0)),     # bc
        ],
        out_specs=(
            pl.BlockSpec((None, None, C, T), lambda s, b: (s, b, 0, 0)),
            pl.BlockSpec((None, None, skip_ch, T), lambda s, b: (s, b, 0, 0)),
        ),
        scratch_shapes=[pltpu.VMEM((hidden, T + 2 * pad_cols), compute_dtype)],
        compiler_params=pltpu.CompilerParams(
            dimension_semantics=("parallel", "parallel"),
            vmem_limit_bytes=_pick_vmem_limit(block_bytes)),
        cost_estimate=pl.CostEstimate(flops=flops, transcendentals=transcendentals,
                                      bytes_accessed=bytes_accessed),
    )(x_s, W1, b1, gamma, beta, Wc, bc)
    return out, skip


# ----------------------------------------------------------------------------
# Parameter init + "generated" weight hyper-network (plain-JAX glue)
# ----------------------------------------------------------------------------
def linear_init(key, in_dim, out_dim):
    kw, kb = jax.random.split(key)
    bound = 1.0 / (in_dim ** 0.5)
    W = jax.random.uniform(kw, (out_dim, in_dim), jnp.float32, -bound, bound)
    b = jax.random.uniform(kb, (out_dim,), jnp.float32, -bound, bound)
    return {'W': W, 'b': b}


def linear_apply(p, x):
    return x @ p['W'].T + p['b']


def init_generated_conv(key, in_ch, out_ch, ksize, embed_dim, btn):
    k1, k2, k3 = jax.random.split(key, 3)
    return {'bottleneck': linear_init(k1, embed_dim, btn),
            'linear': linear_init(k2, btn, out_ch * in_ch * ksize),
            'linear_bias': linear_init(k3, btn, out_ch)}


def gen_conv_weights(p, embedding, out_ch, in_ch, ksize):
    """Returns kernel (S, out, in, K) in the PyTorch conv layout + bias (S, out, 1)."""
    S = embedding.shape[0]
    xe = linear_apply(p['bottleneck'], embedding)                       # (S, btn)
    kern = linear_apply(p['linear'], xe).reshape(S, out_ch, in_ch, ksize)
    bias = linear_apply(p['linear_bias'], xe).reshape(S, out_ch, 1)
    return kern, bias


def init_generated_norm(key, num_feat, embed_dim, btn):
    k1, k2, k3 = jax.random.split(key, 3)
    return {'bottleneck': linear_init(k1, embed_dim, btn),
            'linear_scale': linear_init(k2, btn, num_feat),
            'linear_bias': linear_init(k3, btn, num_feat)}


def gen_norm_weights(p, embedding, num_feat):
    S = embedding.shape[0]
    xe = linear_apply(p['bottleneck'], embedding)
    gamma = linear_apply(p['linear_scale'], xe).reshape(S, num_feat, 1)
    beta = linear_apply(p['linear_bias'], xe).reshape(S, num_feat, 1)
    return gamma, beta


def init_conv_block(key, num_features, hidden, skip_ch, ksize, num_layers,
                    embed_dim, btn):
    layers = []
    for _ in range(num_layers):
        key, k1, k2, k3, k4 = jax.random.split(key, 5)
        layers.append({
            'bottleneck_conv': init_generated_conv(k1, num_features, hidden, 1,
                                                   embed_dim, btn),
            'norm': init_generated_norm(k2, hidden, embed_dim, btn),
            'output_conv': init_generated_conv(k3, hidden, num_features, ksize,
                                               embed_dim, btn),
            'skip_conv': init_generated_conv(k4, hidden, skip_ch, ksize,
                                             embed_dim, btn),
        })
    return layers


# ----------------------------------------------------------------------------
# ConvBlock1d forward (Pallas path)
# ----------------------------------------------------------------------------
def conv_block_1d(x, embedding, layers, *, kernel_size, hidden, skip_ch,
                  compute_dtype=jnp.float32):
    B, S, C, T = x.shape
    K = kernel_size
    L = len(layers)

    # Generate and stack every layer's weights once: (S, L, ...) so the kernel keeps
    # them VMEM-resident per source and indexes the layer axis statically.
    W1_l, b1_l, g_l, bt_l, Wc_l, bc_l = [], [], [], [], [], []
    for lp in layers:
        kern1, b1 = gen_conv_weights(lp['bottleneck_conv'], embedding, hidden, C, 1)
        W1_l.append(kern1[..., 0])                               # (S, hidden, C)
        b1_l.append(b1)                                          # (S, hidden, 1)
        gamma, beta = gen_norm_weights(lp['norm'], embedding, hidden)
        g_l.append(gamma)
        bt_l.append(beta)
        kern_o, bout = gen_conv_weights(lp['output_conv'], embedding, C, hidden, K)
        kern_s, bskip = gen_conv_weights(lp['skip_conv'], embedding, skip_ch, hidden, K)
        kern = jnp.concatenate([kern_o, kern_s], axis=1)         # (S, C+skip, hidden, K)
        Wc_l.append(jnp.transpose(kern, (0, 3, 1, 2)))           # (S, K, C+skip, hidden)
        bc_l.append(jnp.concatenate([bout, bskip], axis=1))      # (S, C+skip, 1)

    W1 = jnp.stack(W1_l, axis=1).astype(compute_dtype)           # (S, L, hidden, C)
    b1 = jnp.stack(b1_l, axis=1)                                 # (S, L, hidden, 1)
    gamma = jnp.stack(g_l, axis=1)                               # (S, L, hidden, 1)
    beta = jnp.stack(bt_l, axis=1)                               # (S, L, hidden, 1)
    Wc = jnp.stack(Wc_l, axis=1).reshape(
        S, L * K, C + skip_ch, hidden).astype(compute_dtype)     # (S, L*K, C+skip, hid)
    bc = jnp.stack(bc_l, axis=1)                                 # (S, L, C+skip, 1)

    x_s = jnp.transpose(x, (1, 0, 2, 3))                         # (S, B, C, T)

    out, skip = conv_block_pallas(x_s, W1, b1, gamma, beta, Wc, bc,
                                  L=L, K=K, C=C, skip_ch=skip_ch, hidden=hidden, T=T,
                                  compute_dtype=compute_dtype)

    out = jnp.transpose(out, (1, 0, 2, 3))                       # back to (B, S, C, T)
    skip = jnp.transpose(skip, (1, 0, 2, 3))
    return out, skip


# ----------------------------------------------------------------------------
# Pure-JAX reference (mirrors the PyTorch forward, f32 / HIGHEST precision)
# ----------------------------------------------------------------------------
def conv_block_1d_ref(x, embedding, layers, *, kernel_size, hidden, skip_ch):
    def mm(eq, a, b):
        return jnp.einsum(eq, a, b, precision=lax.Precision.HIGHEST)

    B, S, C, T = x.shape
    K = kernel_size
    skip_total = jnp.zeros((B, S, skip_ch, T), jnp.float32)
    for idx, lp in enumerate(layers):
        dilation = 2 ** idx
        kern1, b1 = gen_conv_weights(lp['bottleneck_conv'], embedding, hidden, C, 1)
        W1 = kern1[..., 0]
        gamma, beta = gen_norm_weights(lp['norm'], embedding, hidden)
        kern_o, bout = gen_conv_weights(lp['output_conv'], embedding, C, hidden, K)
        kern_s, bskip = gen_conv_weights(lp['skip_conv'], embedding, skip_ch, hidden, K)

        h = mm('shc,bsct->bsht', W1, x) + b1[None]
        mean = jnp.mean(h, axis=(2, 3), keepdims=True)
        var = jnp.mean(jnp.square(h - mean), axis=(2, 3), keepdims=True)
        h = (h - mean) / jnp.sqrt(var + EPS) * gamma[None] + beta[None]

        pad = (K - 1) * dilation
        pl_, pr_ = pad // 2, pad - pad // 2
        hp = jnp.pad(h, ((0, 0), (0, 0), (0, 0), (pl_, pr_)))

        out = jnp.zeros((B, S, C, T), jnp.float32)
        skp = jnp.zeros((B, S, skip_ch, T), jnp.float32)
        for k in range(K):
            hk = hp[..., k * dilation:k * dilation + T]
            out = out + mm('soh,bsht->bsot', kern_o[..., k], hk)
            skp = skp + mm('soh,bsht->bsot', kern_s[..., k], hk)
        x = out + bout[None] + x
        skip_total = skip_total + skp + bskip[None]
    return x, skip_total


if __name__ == "__main__":
    # input (batch, n_sources, num_features, T), embedding (n_sources, embed_dim)
    B, S, C, T = 2, 2, 16, 128
    hidden, skip_ch = 32, 32
    K, num_layers = 3, 3
    embed_dim, btn = 8, 12

    key = jax.random.PRNGKey(0)
    kx, ke, kp = jax.random.split(key, 3)
    x = jax.random.normal(kx, (B, S, C, T), jnp.float32)
    embedding = jax.random.normal(ke, (S, embed_dim), jnp.float32)
    layers = init_conv_block(kp, C, hidden, skip_ch, K, num_layers, embed_dim, btn)

    fwd = jax.jit(functools.partial(conv_block_1d, kernel_size=K,
                                    hidden=hidden, skip_ch=skip_ch))
    out, skip = jax.block_until_ready(fwd(x, embedding, layers))
    assert out.shape == (B, S, C, T) and skip.shape == (B, S, skip_ch, T)

    out_exp, skip_exp = conv_block_1d_ref(x, embedding, layers, kernel_size=K,
                                          hidden=hidden, skip_ch=skip_ch)
    out_err = float(jnp.max(jnp.abs(out - out_exp)))
    skip_err = float(jnp.max(jnp.abs(skip - skip_exp)))
    assert jnp.allclose(out, out_exp, atol=5e-3, rtol=5e-3), out_err
    assert jnp.allclose(skip, skip_exp, atol=5e-3, rtol=5e-3), skip_err

    print("KERNEL_OK")
</pallas_src>

<mosaic_0001>
module attributes {stable_mosaic.version = 11 : i64} {
  func.func @conv_block_kernel(%arg0: i32, %arg1: i32, %arg2: memref<1x1x16x128xf32, #tpu.memory_space<vmem>>, %arg3: memref<1x3x32x16xf32, #tpu.memory_space<vmem>>, %arg4: memref<1x3x32x1xf32, #tpu.memory_space<vmem>>, %arg5: memref<1x3x32x1xf32, #tpu.memory_space<vmem>>, %arg6: memref<1x3x32x1xf32, #tpu.memory_space<vmem>>, %arg7: memref<1x9x48x32xf32, #tpu.memory_space<vmem>>, %arg8: memref<1x3x48x1xf32, #tpu.memory_space<vmem>>, %arg9: memref<1x1x16x128xf32, #tpu.memory_space<vmem>>, %arg10: memref<1x1x32x128xf32, #tpu.memory_space<vmem>>, %arg11: memref<32x384xf32, #tpu.memory_space<vmem>>) attributes {dimension_semantics = [#tpu.dimension_semantics<parallel>, #tpu.dimension_semantics<parallel>], iteration_bounds = array<i64: 2, 2>, scalar_prefetch = 0 : i64, scratch_operands = 1 : i64, tpu.core_type = #tpu.core_type<tc>, window_params = [{transform_indices = @transform_0, window_bounds = array<i64: 1, 1, 16, 128>}, {transform_indices = @transform_1, window_bounds = array<i64: 1, 3, 32, 16>}, {transform_indices = @transform_2, window_bounds = array<i64: 1, 3, 32, 1>}, {transform_indices = @transform_3, window_bounds = array<i64: 1, 3, 32, 1>}, {transform_indices = @transform_4, window_bounds = array<i64: 1, 3, 32, 1>}, {transform_indices = @transform_5, window_bounds = array<i64: 1, 9, 48, 32>}, {transform_indices = @transform_6, window_bounds = array<i64: 1, 3, 48, 1>}, {transform_indices = @transform_7, window_bounds = array<i64: 1, 1, 16, 128>}, {transform_indices = @transform_8, window_bounds = array<i64: 1, 1, 32, 128>}]} {
    %c0 = arith.constant 0 : index
    %c0_0 = arith.constant 0 : index
    %c0_1 = arith.constant 0 : index
    %c0_2 = arith.constant 0 : index
    %0 = vector.load %arg2[%c0, %c0_0, %c0_1, %c0_2] : memref<1x1x16x128xf32, #tpu.memory_space<vmem>>, vector<1x1x16x128xf32>
    %1 = vector.shape_cast %0 : vector<1x1x16x128xf32> to vector<16x128xf32>
    %cst = arith.constant 0.000000e+00 : f32
    %2 = vector.broadcast %cst : f32 to vector<32x128xf32>
    %cst_3 = arith.constant 0.000000e+00 : f32
    %3 = vector.broadcast %cst_3 : f32 to vector<32x384xf32>
    %c0_4 = arith.constant 0 : index
    %c0_5 = arith.constant 0 : index
    %4 = vector.load %arg11[%c0_4, %c0_5] : memref<32x384xf32, #tpu.memory_space<vmem>>, vector<32x384xf32>
    tpu.vector_store %arg11[%c0_4, %c0_5], %3 {strides = array<i32>} : memref<32x384xf32, #tpu.memory_space<vmem>>, vector<32x384xf32>,
    %c0_6 = arith.constant 0 : index
    %c0_7 = arith.constant 0 : index
    %c0_8 = arith.constant 0 : index
    %c0_9 = arith.constant 0 : index
    %5 = vector.load %arg3[%c0_6, %c0_7, %c0_8, %c0_9] : memref<1x3x32x16xf32, #tpu.memory_space<vmem>>, vector<1x1x32x16xf32>
    %6 = vector.shape_cast %5 : vector<1x1x32x16xf32> to vector<32x16xf32>
    %cst_10 = arith.constant dense<0.000000e+00> : vector<32x128xf32>
    %7 = tpu.matmul %6, %1, %cst_10 {dimension_numbers = #tpu.dot_dimension_numbers<[1], [0], [0], [1], [0, 0, 1, 1], [], []>} : vector<32x16xf32>, vector<16x128xf32>, vector<32x128xf32> -> vector<32x128xf32>
    %c0_11 = arith.constant 0 : index
    %c0_12 = arith.constant 0 : index
    %c0_13 = arith.constant 0 : index
    %c0_14 = arith.constant 0 : index
    %8 = vector.load %arg4[%c0_11, %c0_12, %c0_13, %c0_14] : memref<1x3x32x1xf32, #tpu.memory_space<vmem>>, vector<1x1x32x1xf32>
    %9 = vector.shape_cast %8 : vector<1x1x32x1xf32> to vector<32x1xf32>
    %10 = vector.broadcast %9 : vector<32x1xf32> to vector<32x128xf32>
    %11 = arith.addf %7, %10 : vector<32x128xf32>
    %12 = vector.shape_cast %11 : vector<32x128xf32> to vector<1x32x128xf32>
    %cst_15 = arith.constant dense<0.000000e+00> : vector<1xf32>
    %13 = vector.multi_reduction <add>, %12, %cst_15 [1, 2] : vector<1x32x128xf32> to vector<1xf32>
    %14 = vector.shape_cast %13 : vector<1xf32> to vector<1x1x1xf32>
    %15 = vector.extract %14[0, 0, 0] : f32 from vector<1x1x1xf32>
    %16 = vector.broadcast %15 : f32 to vector<1x1xf32>
    %cst_16 = arith.constant 4.096000e+03 : f32
    %17 = vector.broadcast %cst_16 : f32 to vector<1x1xf32>
    %18 = arith.divf %16, %17 : vector<1x1xf32>
    %19 = vector.broadcast %18 : vector<1x1xf32> to vector<32x128xf32>
    %20 = arith.subf %11, %19 : vector<32x128xf32>
    %21 = arith.mulf %20, %20 : vector<32x128xf32>
    %22 = vector.shape_cast %21 : vector<32x128xf32> to vector<1x32x128xf32>
    %cst_17 = arith.constant dense<0.000000e+00> : vector<1xf32>
    %23 = vector.multi_reduction <add>, %22, %cst_17 [1, 2] : vector<1x32x128xf32> to vector<1xf32>
    %24 = vector.shape_cast %23 : vector<1xf32> to vector<1x1x1xf32>
    %25 = vector.extract %24[0, 0, 0] : f32 from vector<1x1x1xf32>
    %26 = vector.broadcast %25 : f32 to vector<1x1xf32>
    %cst_18 = arith.constant 4.096000e+03 : f32
    %27 = vector.broadcast %cst_18 : f32 to vector<1x1xf32>
    %28 = arith.divf %26, %27 : vector<1x1xf32>
    %c0_19 = arith.constant 0 : index
    %c0_20 = arith.constant 0 : index
    %c0_21 = arith.constant 0 : index
    %c0_22 = arith.constant 0 : index
    %29 = vector.load %arg5[%c0_19, %c0_20, %c0_21, %c0_22] : memref<1x3x32x1xf32, #tpu.memory_space<vmem>>, vector<1x1x32x1xf32>
    %30 = vector.shape_cast %29 : vector<1x1x32x1xf32> to vector<32x1xf32>
    %cst_23 = arith.constant 9.99999996E-13 : f32
    %31 = vector.broadcast %cst_23 : f32 to vector<1x1xf32>
    %32 = arith.addf %28, %31 : vector<1x1xf32>
    %33 = math.rsqrt %32 : vector<1x1xf32>
    %34 = vector.broadcast %33 : vector<1x1xf32> to vector<32x1xf32>
    %35 = arith.mulf %30, %34 : vector<32x1xf32>
    %c0_24 = arith.constant 0 : index
    %c0_25 = arith.constant 0 : index
    %c0_26 = arith.constant 0 : index
    %c0_27 = arith.constant 0 : index
    %36 = vector.load %arg6[%c0_24, %c0_25, %c0_26, %c0_27] : memref<1x3x32x1xf32, #tpu.memory_space<vmem>>, vector<1x1x32x1xf32>
    %37 = vector.shape_cast %36 : vector<1x1x32x1xf32> to vector<32x1xf32>
    %38 = vector.broadcast %18 : vector<1x1xf32> to vector<32x1xf32>
    %39 = arith.mulf %38, %35 : vector<32x1xf32>
    %40 = arith.subf %37, %39 : vector<32x1xf32>
    %41 = vector.broadcast %35 : vector<32x1xf32> to vector<32x128xf32>
    %42 = arith.mulf %11, %41 : vector<32x128xf32>
    %43 = vector.broadcast %40 : vector<32x1xf32> to vector<32x128xf32>
    %44 = arith.addf %42, %43 : vector<32x128xf32>
    %c0_28 = arith.constant 0 : index
    %c128 = arith.constant 128 : index
    %45 = vector.load %arg11[%c0_28, %c128] : memref<32x384xf32, #tpu.memory_space<vmem>>, vector<32x128xf32>
    tpu.vector_store %arg11[%c0_28, %c128], %44 {strides = array<i32>} : memref<32x384xf32, #tpu.memory_space<vmem>>, vector<32x128xf32>,
    %cst_29 = arith.constant 0.000000e+00 : f32
    %46 = vector.broadcast %cst_29 : f32 to vector<48x128xf32>
    %c0_30 = arith.constant 0 : index
    %c127 = arith.constant 127 : index
    %47 = vector.load %arg11[%c0_30, %c127] : memref<32x384xf32, #tpu.memory_space<vmem>>, vector<32x128xf32>
    %c0_31 = arith.constant 0 : index
    %c0_32 = arith.constant 0 : index
    %c0_33 = arith.constant 0 : index
    %c0_34 = arith.constant 0 : index
    %48 = vector.load %arg7[%c0_31, %c0_32, %c0_33, %c0_34] : memref<1x9x48x32xf32, #tpu.memory_space<vmem>>, vector<1x1x48x32xf32>
    %49 = vector.shape_cast %48 : vector<1x1x48x32xf32> to vector<48x32xf32>
    %cst_35 = arith.constant dense<0.000000e+00> : vector<48x128xf32>
    %50 = tpu.matmul %49, %47, %cst_35 {dimension_numbers = #tpu.dot_dimension_numbers<[1], [0], [0], [1], [0, 0, 1, 1], [], []>} : vector<48x32xf32>, vector<32x128xf32>, vector<48x128xf32> -> vector<48x128xf32>
    %51 = arith.addf %46, %50 : vector<48x128xf32>
    %c0_36 = arith.constant 0 : index
    %c128_37 = arith.constant 128 : index
    %52 = vector.load %arg11[%c0_36, %c128_37] : memref<32x384xf32, #tpu.memory_space<vmem>>, vector<32x128xf32>
    %c0_38 = arith.constant 0 : index
    %c1 = arith.constant 1 : index
    %c0_39 = arith.constant 0 : index
    %c0_40 = arith.constant 0 : index
    %53 = vector.load %arg7[%c0_38, %c1, %c0_39, %c0_40] : memref<1x9x48x32xf32, #tpu.memory_space<vmem>>, vector<1x1x48x32xf32>
    %54 = vector.shape_cast %53 : vector<1x1x48x32xf32> to vector<48x32xf32>
    %cst_41 = arith.constant dense<0.000000e+00> : vector<48x128xf32>
    %55 = tpu.matmul %54, %52, %cst_41 {dimension_numbers = #tpu.dot_dimension_numbers<[1], [0], [0], [1], [0, 0, 1, 1], [], []>} : vector<48x32xf32>, vector<32x128xf32>, vector<48x128xf32> -> vector<48x128xf32>
    %56 = arith.addf %51, %55 : vector<48x128xf32>
    %c0_42 = arith.constant 0 : index
    %c129 = arith.constant 129 : index
    %57 = vector.load %arg11[%c0_42, %c129] : memref<32x384xf32, #tpu.memory_space<vmem>>, vector<32x128xf32>
    %c0_43 = arith.constant 0 : index
    %c2 = arith.constant 2 : index
    %c0_44 = arith.constant 0 : index
    %c0_45 = arith.constant 0 : index
    %58 = vector.load %arg7[%c0_43, %c2, %c0_44, %c0_45] : memref<1x9x48x32xf32, #tpu.memory_space<vmem>>, vector<1x1x48x32xf32>
    %59 = vector.shape_cast %58 : vector<1x1x48x32xf32> to vector<48x32xf32>
    %cst_46 = arith.constant dense<0.000000e+00> : vector<48x128xf32>
    %60 = tpu.matmul %59, %57, %cst_46 {dimension_numbers = #tpu.dot_dimension_numbers<[1], [0], [0], [1], [0, 0, 1, 1], [], []>} : vector<48x32xf32>, vector<32x128xf32>, vector<48x128xf32> -> vector<48x128xf32>
    %61 = arith.addf %56, %60 : vector<48x128xf32>
    %c0_47 = arith.constant 0 : index
    %c0_48 = arith.constant 0 : index
    %c0_49 = arith.constant 0 : index
    %c0_50 = arith.constant 0 : index
    %62 = vector.load %arg8[%c0_47, %c0_48, %c0_49, %c0_50] : memref<1x3x48x1xf32, #tpu.memory_space<vmem>>, vector<1x1x48x1xf32>
    %63 = vector.shape_cast %62 : vector<1x1x48x1xf32> to vector<48x1xf32>
    %64 = vector.broadcast %63 : vector<48x1xf32> to vector<48x128xf32>
    %65 = arith.addf %61, %64 : vector<48x128xf32>
    %66 = vector.extract_strided_slice %65 {offsets = [0, 0], sizes = [16, 128], strides = [1, 1]} : vector<48x128xf32> to vector<16x128xf32>
    %67 = arith.addf %66, %1 : vector<16x128xf32>
    %68 = vector.extract_strided_slice %65 {offsets = [16, 0], sizes = [32, 128], strides = [1, 1]} : vector<48x128xf32> to vector<32x128xf32>
    %69 = arith.addf %2, %68 : vector<32x128xf32>
    %c0_51 = arith.constant 0 : index
    %c1_52 = arith.constant 1 : index
    %c0_53 = arith.constant 0 : index
    %c0_54 = arith.constant 0 : index
    %70 = vector.load %arg3[%c0_51, %c1_52, %c0_53, %c0_54] : memref<1x3x32x16xf32, #tpu.memory_space<vmem>>, vector<1x1x32x16xf32>
    %71 = vector.shape_cast %70 : vector<1x1x32x16xf32> to vector<32x16xf32>
    %cst_55 = arith.constant dense<0.000000e+00> : vector<32x128xf32>
    %72 = tpu.matmul %71, %67, %cst_55 {dimension_numbers = #tpu.dot_dimension_numbers<[1], [0], [0], [1], [0, 0, 1, 1], [], []>} : vector<32x16xf32>, vector<16x128xf32>, vector<32x128xf32> -> vector<32x128xf32>
    %c0_56 = arith.constant 0 : index
    %c1_57 = arith.constant 1 : index
    %c0_58 = arith.constant 0 : index
    %c0_59 = arith.constant 0 : index
    %73 = vector.load %arg4[%c0_56, %c1_57, %c0_58, %c0_59] : memref<1x3x32x1xf32, #tpu.memory_space<vmem>>, vector<1x1x32x1xf32>
    %74 = vector.shape_cast %73 : vector<1x1x32x1xf32> to vector<32x1xf32>
    %75 = vector.broadcast %74 : vector<32x1xf32> to vector<32x128xf32>
    %76 = arith.addf %72, %75 : vector<32x128xf32>
    %77 = vector.shape_cast %76 : vector<32x128xf32> to vector<1x32x128xf32>
    %cst_60 = arith.constant dense<0.000000e+00> : vector<1xf32>
    %78 = vector.multi_reduction <add>, %77, %cst_60 [1, 2] : vector<1x32x128xf32> to vector<1xf32>
    %79 = vector.shape_cast %78 : vector<1xf32> to vector<1x1x1xf32>
    %80 = vector.extract %79[0, 0, 0] : f32 from vector<1x1x1xf32>
    %81 = vector.broadcast %80 : f32 to vector<1x1xf32>
    %cst_61 = arith.constant 4.096000e+03 : f32
    %82 = vector.broadcast %cst_61 : f32 to vector<1x1xf32>
    %83 = arith.divf %81, %82 : vector<1x1xf32>
    %84 = vector.broadcast %83 : vector<1x1xf32> to vector<32x128xf32>
    %85 = arith.subf %76, %84 : vector<32x128xf32>
    %86 = arith.mulf %85, %85 : vector<32x128xf32>
    %87 = vector.shape_cast %86 : vector<32x128xf32> to vector<1x32x128xf32>
    %cst_62 = arith.constant dense<0.000000e+00> : vector<1xf32>
    %88 = vector.multi_reduction <add>, %87, %cst_62 [1, 2] : vector<1x32x128xf32> to vector<1xf32>
    %89 = vector.shape_cast %88 : vector<1xf32> to vector<1x1x1xf32>
    %90 = vector.extract %89[0, 0, 0] : f32 from vector<1x1x1xf32>
    %91 = vector.broadcast %90 : f32 to vector<1x1xf32>
    %cst_63 = arith.constant 4.096000e+03 : f32
    %92 = vector.broadcast %cst_63 : f32 to vector<1x1xf32>
    %93 = arith.divf %91, %92 : vector<1x1xf32>
    %c0_64 = arith.constant 0 : index
    %c1_65 = arith.constant 1 : index
    %c0_66 = arith.constant 0 : index
    %c0_67 = arith.constant 0 : index
    %94 = vector.load %arg5[%c0_64, %c1_65, %c0_66, %c0_67] : memref<1x3x32x1xf32, #tpu.memory_space<vmem>>, vector<1x1x32x1xf32>
    %95 = vector.shape_cast %94 : vector<1x1x32x1xf32> to vector<32x1xf32>
    %cst_68 = arith.constant 9.99999996E-13 : f32
    %96 = vector.broadcast %cst_68 : f32 to vector<1x1xf32>
    %97 = arith.addf %93, %96 : vector<1x1xf32>
    %98 = math.rsqrt %97 : vector<1x1xf32>
    %99 = vector.broadcast %98 : vector<1x1xf32> to vector<32x1xf32>
    %100 = arith.mulf %95, %99 : vector<32x1xf32>
    %c0_69 = arith.constant 0 : index
    %c1_70 = arith.constant 1 : index
    %c0_71 = arith.constant 0 : index
    %c0_72 = arith.constant 0 : index
    %101 = vector.load %arg6[%c0_69, %c1_70, %c0_71, %c0_72] : memref<1x3x32x1xf32, #tpu.memory_space<vmem>>, vector<1x1x32x1xf32>
    %102 = vector.shape_cast %101 : vector<1x1x32x1xf32> to vector<32x1xf32>
    %103 = vector.broadcast %83 : vector<1x1xf32> to vector<32x1xf32>
    %104 = arith.mulf %103, %100 : vector<32x1xf32>
    %105 = arith.subf %102, %104 : vector<32x1xf32>
    %106 = vector.broadcast %100 : vector<32x1xf32> to vector<32x128xf32>
    %107 = arith.mulf %76, %106 : vector<32x128xf32>
    %108 = vector.broadcast %105 : vector<32x1xf32> to vector<32x128xf32>
    %109 = arith.addf %107, %108 : vector<32x128xf32>
    %c0_73 = arith.constant 0 : index
    %c128_74 = arith.constant 128 : index
    %110 = vector.load %arg11[%c0_73, %c128_74] : memref<32x384xf32, #tpu.memory_space<vmem>>, vector<32x128xf32>
    tpu.vector_store %arg11[%c0_73, %c128_74], %109 {strides = array<i32>} : memref<32x384xf32, #tpu.memory_space<vmem>>, vector<32x128xf32>,
    %cst_75 = arith.constant 0.000000e+00 : f32
    %111 = vector.broadcast %cst_75 : f32 to vector<48x128xf32>
    %c0_76 = arith.constant 0 : index
    %c126 = arith.constant 126 : index
    %112 = vector.load %arg11[%c0_76, %c126] : memref<32x384xf32, #tpu.memory_space<vmem>>, vector<32x128xf32>
    %c0_77 = arith.constant 0 : index
    %c3 = arith.constant 3 : index
    %c0_78 = arith.constant 0 : index
    %c0_79 = arith.constant 0 : index
    %113 = vector.load %arg7[%c0_77, %c3, %c0_78, %c0_79] : memref<1x9x48x32xf32, #tpu.memory_space<vmem>>, vector<1x1x48x32xf32>
    %114 = vector.shape_cast %113 : vector<1x1x48x32xf32> to vector<48x32xf32>
    %cst_80 = arith.constant dense<0.000000e+00> : vector<48x128xf32>
    %115 = tpu.matmul %114, %112, %cst_80 {dimension_numbers = #tpu.dot_dimension_numbers<[1], [0], [0], [1], [0, 0, 1, 1], [], []>} : vector<48x32xf32>, vector<32x128xf32>, vector<48x128xf32> -> vector<48x128xf32>
    %116 = arith.addf %111, %115 : vector<48x128xf32>
    %c0_81 = arith.constant 0 : index
    %c128_82 = arith.constant 128 : index
    %117 = vector.load %arg11[%c0_81, %c128_82] : memref<32x384xf32, #tpu.memory_space<vmem>>, vector<32x128xf32>
    %c0_83 = arith.constant 0 : index
    %c4 = arith.constant 4 : index
    %c0_84 = arith.constant 0 : index
    %c0_85 = arith.constant 0 : index
    %118 = vector.load %arg7[%c0_83, %c4, %c0_84, %c0_85] : memref<1x9x48x32xf32, #tpu.memory_space<vmem>>, vector<1x1x48x32xf32>
    %119 = vector.shape_cast %118 : vector<1x1x48x32xf32> to vector<48x32xf32>
    %cst_86 = arith.constant dense<0.000000e+00> : vector<48x128xf32>
    %120 = tpu.matmul %119, %117, %cst_86 {dimension_numbers = #tpu.dot_dimension_numbers<[1], [0], [0], [1], [0, 0, 1, 1], [], []>} : vector<48x32xf32>, vector<32x128xf32>, vector<48x128xf32> -> vector<48x128xf32>
    %121 = arith.addf %116, %120 : vector<48x128xf32>
    %c0_87 = arith.constant 0 : index
    %c130 = arith.constant 130 : index
    %122 = vector.load %arg11[%c0_87, %c130] : memref<32x384xf32, #tpu.memory_space<vmem>>, vector<32x128xf32>
    %c0_88 = arith.constant 0 : index
    %c5 = arith.constant 5 : index
    %c0_89 = arith.constant 0 : index
    %c0_90 = arith.constant 0 : index
    %123 = vector.load %arg7[%c0_88, %c5, %c0_89, %c0_90] : memref<1x9x48x32xf32, #tpu.memory_space<vmem>>, vector<1x1x48x32xf32>
    %124 = vector.shape_cast %123 : vector<1x1x48x32xf32> to vector<48x32xf32>
    %cst_91 = arith.constant dense<0.000000e+00> : vector<48x128xf32>
    %125 = tpu.matmul %124, %122, %cst_91 {dimension_numbers = #tpu.dot_dimension_numbers<[1], [0], [0], [1], [0, 0, 1, 1], [], []>} : vector<48x32xf32>, vector<32x128xf32>, vector<48x128xf32> -> vector<48x128xf32>
    %126 = arith.addf %121, %125 : vector<48x128xf32>
    %c0_92 = arith.constant 0 : index
    %c1_93 = arith.constant 1 : index
    %c0_94 = arith.constant 0 : index
    %c0_95 = arith.constant 0 : index
    %127 = vector.load %arg8[%c0_92, %c1_93, %c0_94, %c0_95] : memref<1x3x48x1xf32, #tpu.memory_space<vmem>>, vector<1x1x48x1xf32>
    %128 = vector.shape_cast %127 : vector<1x1x48x1xf32> to vector<48x1xf32>
    %129 = vector.broadcast %128 : vector<48x1xf32> to vector<48x128xf32>
    %130 = arith.addf %126, %129 : vector<48x128xf32>
    %131 = vector.extract_strided_slice %130 {offsets = [0, 0], sizes = [16, 128], strides = [1, 1]} : vector<48x128xf32> to vector<16x128xf32>
    %132 = arith.addf %131, %67 : vector<16x128xf32>
    %133 = vector.extract_strided_slice %130 {offsets = [16, 0], sizes = [32, 128], strides = [1, 1]} : vector<48x128xf32> to vector<32x128xf32>
    %134 = arith.addf %69, %133 : vector<32x128xf32>
    %c0_96 = arith.constant 0 : index
    %c2_97 = arith.constant 2 : index
    %c0_98 = arith.constant 0 : index
    %c0_99 = arith.constant 0 : index
    %135 = vector.load %arg3[%c0_96, %c2_97, %c0_98, %c0_99] : memref<1x3x32x16xf32, #tpu.memory_space<vmem>>, vector<1x1x32x16xf32>
    %136 = vector.shape_cast %135 : vector<1x1x32x16xf32> to vector<32x16xf32>
    %cst_100 = arith.constant dense<0.000000e+00> : vector<32x128xf32>
    %137 = tpu.matmul %136, %132, %cst_100 {dimension_numbers = #tpu.dot_dimension_numbers<[1], [0], [0], [1], [0, 0, 1, 1], [], []>} : vector<32x16xf32>, vector<16x128xf32>, vector<32x128xf32> -> vector<32x128xf32>
    %c0_101 = arith.constant 0 : index
    %c2_102 = arith.constant 2 : index
    %c0_103 = arith.constant 0 : index
    %c0_104 = arith.constant 0 : index
    %138 = vector.load %arg4[%c0_101, %c2_102, %c0_103, %c0_104] : memref<1x3x32x1xf32, #tpu.memory_space<vmem>>, vector<1x1x32x1xf32>
    %139 = vector.shape_cast %138 : vector<1x1x32x1xf32> to vector<32x1xf32>
    %140 = vector.broadcast %139 : vector<32x1xf32> to vector<32x128xf32>
    %141 = arith.addf %137, %140 : vector<32x128xf32>
    %142 = vector.shape_cast %141 : vector<32x128xf32> to vector<1x32x128xf32>
    %cst_105 = arith.constant dense<0.000000e+00> : vector<1xf32>
    %143 = vector.multi_reduction <add>, %142, %cst_105 [1, 2] : vector<1x32x128xf32> to vector<1xf32>
    %144 = vector.shape_cast %143 : vector<1xf32> to vector<1x1x1xf32>
    %145 = vector.extract %144[0, 0, 0] : f32 from vector<1x1x1xf32>
    %146 = vector.broadcast %145 : f32 to vector<1x1xf32>
    %cst_106 = arith.constant 4.096000e+03 : f32
    %147 = vector.broadcast %cst_106 : f32 to vector<1x1xf32>
    %148 = arith.divf %146, %147 : vector<1x1xf32>
    %149 = vector.broadcast %148 : vector<1x1xf32> to vector<32x128xf32>
    %150 = arith.subf %141, %149 : vector<32x128xf32>
    %151 = arith.mulf %150, %150 : vector<32x128xf32>
    %152 = vector.shape_cast %151 : vector<32x128xf32> to vector<1x32x128xf32>
    %cst_107 = arith.constant dense<0.000000e+00> : vector<1xf32>
    %153 = vector.multi_reduction <add>, %152, %cst_107 [1, 2] : vector<1x32x128xf32> to vector<1xf32>
    %154 = vector.shape_cast %153 : vector<1xf32> to vector<1x1x1xf32>
    %155 = vector.extract %154[0, 0, 0] : f32 from vector<1x1x1xf32>
    %156 = vector.broadcast %155 : f32 to vector<1x1xf32>
    %cst_108 = arith.constant 4.096000e+03 : f32
    %157 = vector.broadcast %cst_108 : f32 to vector<1x1xf32>
    %158 = arith.divf %156, %157 : vector<1x1xf32>
    %c0_109 = arith.constant 0 : index
    %c2_110 = arith.constant 2 : index
    %c0_111 = arith.constant 0 : index
    %c0_112 = arith.constant 0 : index
    %159 = vector.load %arg5[%c0_109, %c2_110, %c0_111, %c0_112] : memref<1x3x32x1xf32, #tpu.memory_space<vmem>>, vector<1x1x32x1xf32>
    %160 = vector.shape_cast %159 : vector<1x1x32x1xf32> to vector<32x1xf32>
    %cst_113 = arith.constant 9.99999996E-13 : f32
    %161 = vector.broadcast %cst_113 : f32 to vector<1x1xf32>
    %162 = arith.addf %158, %161 : vector<1x1xf32>
    %163 = math.rsqrt %162 : vector<1x1xf32>
    %164 = vector.broadcast %163 : vector<1x1xf32> to vector<32x1xf32>
    %165 = arith.mulf %160, %164 : vector<32x1xf32>
    %c0_114 = arith.constant 0 : index
    %c2_115 = arith.constant 2 : index
    %c0_116 = arith.constant 0 : index
    %c0_117 = arith.constant 0 : index
    %166 = vector.load %arg6[%c0_114, %c2_115, %c0_116, %c0_117] : memref<1x3x32x1xf32, #tpu.memory_space<vmem>>, vector<1x1x32x1xf32>
    %167 = vector.shape_cast %166 : vector<1x1x32x1xf32> to vector<32x1xf32>
    %168 = vector.broadcast %148 : vector<1x1xf32> to vector<32x1xf32>
    %169 = arith.mulf %168, %165 : vector<32x1xf32>
    %170 = arith.subf %167, %169 : vector<32x1xf32>
    %171 = vector.broadcast %165 : vector<32x1xf32> to vector<32x128xf32>
    %172 = arith.mulf %141, %171 : vector<32x128xf32>
    %173 = vector.broadcast %170 : vector<32x1xf32> to vector<32x128xf32>
    %174 = arith.addf %172, %173 : vector<32x128xf32>
    %c0_118 = arith.constant 0 : index
    %c128_119 = arith.constant 128 : index
    %175 = vector.load %arg11[%c0_118, %c128_119] : memref<32x384xf32, #tpu.memory_space<vmem>>, vector<32x128xf32>
    tpu.vector_store %arg11[%c0_118, %c128_119], %174 {strides = array<i32>} : memref<32x384xf32, #tpu.memory_space<vmem>>, vector<32x128xf32>,
    %cst_120 = arith.constant 0.000000e+00 : f32
    %176 = vector.broadcast %cst_120 : f32 to vector<48x128xf32>
    %c0_121 = arith.constant 0 : index
    %c124 = arith.constant 124 : index
    %177 = vector.load %arg11[%c0_121, %c124] : memref<32x384xf32, #tpu.memory_space<vmem>>, vector<32x128xf32>
    %c0_122 = arith.constant 0 : index
    %c6 = arith.constant 6 : index
    %c0_123 = arith.constant 0 : index
    %c0_124 = arith.constant 0 : index
    %178 = vector.load %arg7[%c0_122, %c6, %c0_123, %c0_124] : memref<1x9x48x32xf32, #tpu.memory_space<vmem>>, vector<1x1x48x32xf32>
    %179 = vector.shape_cast %178 : vector<1x1x48x32xf32> to vector<48x32xf32>
    %cst_125 = arith.constant dense<0.000000e+00> : vector<48x128xf32>
    %180 = tpu.matmul %179, %177, %cst_125 {dimension_numbers = #tpu.dot_dimension_numbers<[1], [0], [0], [1], [0, 0, 1, 1], [], []>} : vector<48x32xf32>, vector<32x128xf32>, vector<48x128xf32> -> vector<48x128xf32>
    %181 = arith.addf %176, %180 : vector<48x128xf32>
    %c0_126 = arith.constant 0 : index
    %c128_127 = arith.constant 128 : index
    %182 = vector.load %arg11[%c0_126, %c128_127] : memref<32x384xf32, #tpu.memory_space<vmem>>, vector<32x128xf32>
    %c0_128 = arith.constant 0 : index
    %c7 = arith.constant 7 : index
    %c0_129 = arith.constant 0 : index
    %c0_130 = arith.constant 0 : index
    %183 = vector.load %arg7[%c0_128, %c7, %c0_129, %c0_130] : memref<1x9x48x32xf32, #tpu.memory_space<vmem>>, vector<1x1x48x32xf32>
    %184 = vector.shape_cast %183 : vector<1x1x48x32xf32> to vector<48x32xf32>
    %cst_131 = arith.constant dense<0.000000e+00> : vector<48x128xf32>
    %185 = tpu.matmul %184, %182, %cst_131 {dimension_numbers = #tpu.dot_dimension_numbers<[1], [0], [0], [1], [0, 0, 1, 1], [], []>} : vector<48x32xf32>, vector<32x128xf32>, vector<48x128xf32> -> vector<48x128xf32>
    %186 = arith.addf %181, %185 : vector<48x128xf32>
    %c0_132 = arith.constant 0 : index
    %c132 = arith.constant 132 : index
    %187 = vector.load %arg11[%c0_132, %c132] : memref<32x384xf32, #tpu.memory_space<vmem>>, vector<32x128xf32>
    %c0_133 = arith.constant 0 : index
    %c8 = arith.constant 8 : index
    %c0_134 = arith.constant 0 : index
    %c0_135 = arith.constant 0 : index
    %188 = vector.load %arg7[%c0_133, %c8, %c0_134, %c0_135] : memref<1x9x48x32xf32, #tpu.memory_space<vmem>>, vector<1x1x48x32xf32>
    %189 = vector.shape_cast %188 : vector<1x1x48x32xf32> to vector<48x32xf32>
    %cst_136 = arith.constant dense<0.000000e+00> : vector<48x128xf32>
    %190 = tpu.matmul %189, %187, %cst_136 {dimension_numbers = #tpu.dot_dimension_numbers<[1], [0], [0], [1], [0, 0, 1, 1], [], []>} : vector<48x32xf32>, vector<32x128xf32>, vector<48x128xf32> -> vector<48x128xf32>
    %191 = arith.addf %186, %190 : vector<48x128xf32>
    %c0_137 = arith.constant 0 : index
    %c2_138 = arith.constant 2 : index
    %c0_139 = arith.constant 0 : index
    %c0_140 = arith.constant 0 : index
    %192 = vector.load %arg8[%c0_137, %c2_138, %c0_139, %c0_140] : memref<1x3x48x1xf32, #tpu.memory_space<vmem>>, vector<1x1x48x1xf32>
    %193 = vector.shape_cast %192 : vector<1x1x48x1xf32> to vector<48x1xf32>
    %194 = vector.broadcast %193 : vector<48x1xf32> to vector<48x128xf32>
    %195 = arith.addf %191, %194 : vector<48x128xf32>
    %196 = vector.extract_strided_slice %195 {offsets = [0, 0], sizes = [16, 128], strides = [1, 1]} : vector<48x128xf32> to vector<16x128xf32>
    %197 = arith.addf %196, %132 : vector<16x128xf32>
    %198 = vector.extract_strided_slice %195 {offsets = [16, 0], sizes = [32, 128], strides = [1, 1]} : vector<48x128xf32> to vector<32x128xf32>
    %199 = arith.addf %134, %198 : vector<32x128xf32>
    %c0_141 = arith.constant 0 : index
    %c0_142 = arith.constant 0 : index
    %c0_143 = arith.constant 0 : index
    %c0_144 = arith.constant 0 : index
    %200 = vector.load %arg9[%c0_141, %c0_142, %c0_143, %c0_144] : memref<1x1x16x128xf32, #tpu.memory_space<vmem>>, vector<1x1x16x128xf32>
    %201 = vector.shape_cast %200 : vector<1x1x16x128xf32> to vector<16x128xf32>
    %202 = vector.shape_cast %197 : vector<16x128xf32> to vector<1x1x16x128xf32>
    tpu.vector_store %arg9[%c0_141, %c0_142, %c0_143, %c0_144], %202 {strides = array<i32>} : memref<1x1x16x128xf32, #tpu.memory_space<vmem>>, vector<1x1x16x128xf32>,
    %c0_145 = arith.constant 0 : index
    %c0_146 = arith.constant 0 : index
    %c0_147 = arith.constant 0 : index
    %c0_148 = arith.constant 0 : index
    %203 = vector.load %arg10[%c0_145, %c0_146, %c0_147, %c0_148] : memref<1x1x32x128xf32, #tpu.memory_space<vmem>>, vector<1x1x32x128xf32>
    %204 = vector.shape_cast %203 : vector<1x1x32x128xf32> to vector<32x128xf32>
    %205 = vector.shape_cast %199 : vector<32x128xf32> to vector<1x1x32x128xf32>
    tpu.vector_store %arg10[%c0_145, %c0_146, %c0_147, %c0_148], %205 {strides = array<i32>} : memref<1x1x32x128xf32, #tpu.memory_space<vmem>>, vector<1x1x32x128xf32>,
    return
  }
  func.func @transform_0(%arg0: i32, %arg1: i32) -> (i32, i32, i32, i32) {
    %c0_i32 = arith.constant 0 : i32
    %c0_i32_0 = arith.constant 0 : i32
    %c0_i32_1 = arith.constant 0 : i32
    return %arg0, %arg1, %c0_i32, %c0_i32_0 : i32, i32, i32, i32
  }
  func.func @transform_1(%arg0: i32, %arg1: i32) -> (i32, i32, i32, i32) {
    %c0_i32 = arith.constant 0 : i32
    %c0_i32_0 = arith.constant 0 : i32
    %c0_i32_1 = arith.constant 0 : i32
    %c0_i32_2 = arith.constant 0 : i32
    return %arg0, %c0_i32, %c0_i32_0, %c0_i32_1 : i32, i32, i32, i32
  }
  func.func @transform_2(%arg0: i32, %arg1: i32) -> (i32, i32, i32, i32) {
    %c0_i32 = arith.constant 0 : i32
    %c0_i32_0 = arith.constant 0 : i32
    %c0_i32_1 = arith.constant 0 : i32
    %c0_i32_2 = arith.constant 0 : i32
    return %arg0, %c0_i32, %c0_i32_0, %c0_i32_1 : i32, i32, i32, i32
  }
  func.func @transform_3(%arg0: i32, %arg1: i32) -> (i32, i32, i32, i32) {
    %c0_i32 = arith.constant 0 : i32
    %c0_i32_0 = arith.constant 0 : i32
    %c0_i32_1 = arith.constant 0 : i32
    %c0_i32_2 = arith.constant 0 : i32
    return %arg0, %c0_i32, %c0_i32_0, %c0_i32_1 : i32, i32, i32, i32
  }
  func.func @transform_4(%arg0: i32, %arg1: i32) -> (i32, i32, i32, i32) {
    %c0_i32 = arith.constant 0 : i32
    %c0_i32_0 = arith.constant 0 : i32
    %c0_i32_1 = arith.constant 0 : i32
    %c0_i32_2 = arith.constant 0 : i32
    return %arg0, %c0_i32, %c0_i32_0, %c0_i32_1 : i32, i32, i32, i32
  }
  func.func @transform_5(%arg0: i32, %arg1: i32) -> (i32, i32, i32, i32) {
    %c0_i32 = arith.constant 0 : i32
    %c0_i32_0 = arith.constant 0 : i32
    %c0_i32_1 = arith.constant 0 : i32
    %c0_i32_2 = arith.constant 0 : i32
    return %arg0, %c0_i32, %c0_i32_0, %c0_i32_1 : i32, i32, i32, i32
  }
  func.func @transform_6(%arg0: i32, %arg1: i32) -> (i32, i32, i32, i32) {
    %c0_i32 = arith.constant 0 : i32
    %c0_i32_0 = arith.constant 0 : i32
    %c0_i32_1 = arith.constant 0 : i32
    %c0_i32_2 = arith.constant 0 : i32
    return %arg0, %c0_i32, %c0_i32_0, %c0_i32_1 : i32, i32, i32, i32
  }
  func.func @transform_7(%arg0: i32, %arg1: i32) -> (i32, i32, i32, i32) {
    %c0_i32 = arith.constant 0 : i32
    %c0_i32_0 = arith.constant 0 : i32
    %c0_i32_1 = arith.constant 0 : i32
    return %arg0, %arg1, %c0_i32, %c0_i32_0 : i32, i32, i32, i32
  }
  func.func @transform_8(%arg0: i32, %arg1: i32) -> (i32, i32, i32, i32) {
    %c0_i32 = arith.constant 0 : i32
    %c0_i32_0 = arith.constant 0 : i32
    %c0_i32_1 = arith.constant 0 : i32
    return %arg0, %arg1, %c0_i32, %c0_i32_0 : i32, i32, i32, i32
  }
}

</mosaic_0001>

<bundles_post_ra>
// kernel: conv_block_1d.1
= control target key start
LH: loop header
LB: loop body
LE: loop exit
PB: predicated region body
PF: predicated region fallthrough
CT: control target
= control target key end

     0   :  { %s3829_s27 = smov 0   ;;  %s3831_s28 = smov 0   ;;  %s4267_s0 = inlined_call_operand.vmem [shape: f32[2,2,16,128], index: 0, kind: input, shape index: {}]   ;;  %s4268_s1 = inlined_call_operand.vmem [shape: f32[2,3,32,16], index: 1, kind: input, shape index: {}]   ;;  %s4269_s2 = inlined_call_operand.vmem [shape: f32[2,3,32,1], index: 2, kind: input, shape index: {}]   ;;  %s4270_s3 = inlined_call_operand.vmem [shape: f32[2,3,32,1], index: 3, kind: input, shape index: {}]   ;;  %s4271_s4 = inlined_call_operand.vmem [shape: f32[2,3,32,1], index: 4, kind: input, shape index: {}]   ;;  %s4272_s5 = inlined_call_operand.vmem [shape: f32[2,9,48,32], index: 5, kind: input, shape index: {}]   ;;  %s4273_s6 = inlined_call_operand.vmem [shape: f32[2,3,48,1], index: 6, kind: input, shape index: {}]   ;;  %s4274_s7 = inlined_call_operand.vmem [shape: f32[2,2,16,128], index: 7, kind: output, shape index: {0}]   ;;  %s4275_s8 = inlined_call_operand.vmem [shape: f32[2,2,32,128], index: 8, kind: output, shape index: {1}]  }
   0x1   :  { %s3833_s29 = smov 0   ;;  %s3835_s30 = smov 0  }
   0x2   :  { %s3837_s9 = smov 0  }
   0x3 LB: > { %s28_s10 = sadd.s32 1, %s3766_s29  ;;  %s31_s11 = sadd.s32 1, %s3770_s30  ;;  %s3774_s9 = sphi %s3837_s9, %s19_s9   ;;  %s3770_s30 = sphi %s3835_s30, %s4279_s30   ;;  %s3766_s29 = sphi %s3833_s29, %s4278_s29   ;;  %s3762_s28 = sphi %s3831_s28, %s4277_s28   ;;  %s3758_s27 = sphi %s3829_s27, %s4276_s27  }
   0x4   : > { %p29_p0 = scmp.ge.s32.totalorder %s28_s10, 2  ;;  %p2934_p1 = scmp.ge.s32.totalorder %s3774_s9, 1 }
   0x5   : > { %p347_p2 = scmp.lt.s32.totalorder %s3774_s9, 5 }
   0x6   : > { %s4281_s10 = smov (%p29_p0, %s28_s10), 0  ;;  %s4283_s11 = smov (!%p29_p0, %s31_s11), %s3770_s30 }
   0x7   : > { %p348_p3 = pnand %p2934_p1, %p347_p2  ;;  %p33_p4 = scmp.ge.s32.totalorder %s4283_s11, 2 }
   0x8   : > { %p428_p5 = scmp.lt.s32.totalorder (!%p348_p3), %s3762_s28, 1  ;;  %p430_p6 = scmp.lt.s32.totalorder (!%p348_p3), %s3758_s27, 1  ;;  %v3776_v0 = vmov (!%p348_p3), 0   ;;  %vm527_vm0 = vcmask (!%p348_p3), 130048   ;;  %vm757_vm1 = vcmask (!%p348_p3), 261120   ;;  %vm895_vm2 = vcmask (!%p348_p3), 7168  }
   0x9   : > { %s4285_s11 = smov (%p33_p4, %s4283_s11), 0  ;;  %351 = sbr.rel (%p348_p3) target bundleno = 3522 (0xdc2), region = 48 }
   0xa   : > { %3608 = vset.pattern.permute.xlu0 (!%p348_p3), %v3776_v0  ;;  %3609 = vset.pattern.permute.xlu1 (!%p348_p3), %v3776_v0  ;;  %s3779_s17 = smov (!%p348_p3), 127   ;;  %vm1056_vm3 = vcmask (!%p348_p3), 1039360   ;;  %vm1630_vm4 = vcmask (!%p348_p3), 15360   ;;  %vm1791_vm5 = vcmask (!%p348_p3), 1031168   ;;  %vm2366_vm6 = vcmask (!%p348_p3), 31744  }
   0xb   : > { %vm2527_vm7 = vcmask (!%p348_p3), 1014784  }
  0x10   : > { %s4287_s28 = smov (!%p428_p5, %s3762_s28), 1  ;;  %s4289_s27 = smov (!%p430_p6, %s3758_s27), 1 }
  0x11   : > { %s2936_s12 = sshll.u32 %s4287_s28, 2  ;;  %s2935_s13 = sshll.u32 %s4289_s27, 1 }
  0x12   : > { %s3865_s14 = sadd.s32 %s2936_s12, %s2935_s13  ;;  %s3868_s15 = smul.u32 96, %s4287_s28 }
  0x13   : > { %s2937_s16 = sshll.u32 %s3865_s14, 3  ;;  %s3547_s13 = smul.u32 144, %s4287_s28 }
  0x14   : > { %s436_s19 = scalar_lea.vmem %s4267_s0, %s2937_s16  ;;  %s3886_s22 = scalar_lea.vmem %s4268_s1, %s3868_s15 }
  0x15   : > { %v3876_v1 = vld [vmem:[%s436_s19] sm:$0xff]  ;;  %v3878_v2 = vld [vmem:[%s436_s19 + $0x8] sm:$0xff]  ;;  %s3893_s25 = scalar_lea.vmem %s4269_s2, %s3868_s15  ;;  %v501_v8 = vld [vmem:[%s3886_s22 + $0x10] sm:$0xff]  ;;  %s3926_s18 = scalar_lea.vmem %s4270_s3, %s3868_s15 }
  0x16   : > { %v3401_v3 = vpack.c.bf16 %v3878_v2, %v3876_v1  ;;  %v499_v4 = vld [vmem:[%s3886_s22] sm:$0xff]  ;;  %v505_v6 = vld [vmem:[%s3893_s25 + $0x10] sm:$0xff]  ;;  %v500_v7 = vld [vmem:[%s3886_s22 + $0x8] sm:$0xff]  ;;  %s3936_s21 = scalar_lea.vmem %s4271_s4, %s3868_s15  ;;  %s3546_s15 = smul.u32 432, %s4287_s28 }
  0x17   : > { %3222 = vmatprep.mubr.msk.f32.mxu0 %vm527_vm0, %v499_v4  ;;  %v503_v5 = vld [vmem:[%s3893_s25] sm:$0xff]  ;;  %519 = vperm.xlu1 %3609, %v505_v6   ;;  %v504_v9 = vld [vmem:[%s3893_s25 + $0x8] sm:$0xff]  ;;  %v506_v10 = vld [vmem:[%s3893_s25 + $0x18] sm:$0xff] }
  0x18   : > { %3402 = vmatprep.subr.bf16.mxu0 %v3401_v3  ;;  %509 = vperm.xlu0 %3608, %v503_v5   ;;  %v502_v11 = vld [vmem:[%s3886_s22 + $0x18] sm:$0xff]  ;;  %v663_v57 = vld [vmem:[%s3926_s18 + $0x8] sm:$0xff]  ;;  %v662_v58 = vld [vmem:[%s3926_s18] sm:$0xff] }
  0x19   : > { %3404 = vmatpush3.bf16.msra.mxu0 %v3401_v3  ;;  %v665_v62 = vld [vmem:[%s3926_s18 + $0x18] sm:$0xff]  ;;  %v664_v63 = vld [vmem:[%s3926_s18 + $0x10] sm:$0xff]  ;;  %v673_v6 = vld [vmem:[%s3936_s21 + $0x8] sm:$0xff] }
  0x1b   : > { %524 = vperm.xlu1 %3609, %v506_v10  }
  0x1c   : > { %3223 = vmatmul.mubr.msk.f32.vlgmr.msra.gmra.mrb[0].mxu0 %vm527_vm0, %v500_v7  ;;  %514 = vperm.xlu0 %3608, %v504_v9   ;;  %v672_v7 = vld [vmem:[%s3936_s21] sm:$0xff] }
  0x1d   : > { %3225 = vmatprep.mubr.msk.f32.mxu0 %vm527_vm0, %v501_v8 }
  0x20   : > { %3226 = vmatmul.mubr.msk.f32.gmra.mrb[2].mxu0 %vm527_vm0, %v502_v11 }
  0x96   : > { %v520_v13 = vpop.permute.xlu1 %519 }
  0x97   : > { %v510_v12 = vpop.permute.xlu0 %509 }
  0x9a   : > { %v525_v20 = vpop.permute.xlu1 %524 }
  0x9b   : > { %v515_v14 = vpop.permute.xlu0 %514 }
  0xef   : > { %v3224_v15 = vpop.f32.mrb[0].mxu0 }
  0xf0   : > { %v606_v16 = vpop.f32.mrb[1].mxu0  ;;  %v3906_v17 = vadd.f32 %v3224_v15, %v515_v14 }
  0xf1   : > { %v3908_v18 = vadd.f32 %v606_v16, %v510_v12  ;;  %v675_v12 = vld [vmem:[%s3936_s21 + $0x18] sm:$0xff] }
  0xf3   : > { %v3227_v19 = vpop.f32.mrb[2].mxu0  ;;  %v625_v22 = vadd.f32 %v3906_v17, %v3908_v18 }
  0xf4   : > { %v616_v21 = vpop.f32.mrb[3].mxu0  ;;  %v3914_v24 = vadd.f32 %v3227_v19, %v525_v20 }
  0xf5   : > { %v3912_v23 = vadd.f32 %v616_v21, %v520_v13  ;;  %v674_v13 = vld [vmem:[%s3936_s21 + $0x10] sm:$0xff] }
  0xf7   : > { %v626_v25 = vadd.f32 %v625_v22, %v3912_v23 }
  0xf9   : > { %v627_v26 = vadd.f32 %v626_v25, %v3914_v24 }
  0xfb   : > { %628 = vadd.xlane.f32.xlu0 %v627_v26 }
 0x188   : > { %v629_v27 = vpop.xlane.xlu0 %628 }
 0x189   : > { %v630_v28 = vrot.slane %v629_v27, 4 }
 0x18b   : > { %v631_v29 = vadd.f32 %v630_v28, %v629_v27 }
 0x18d   : > { %v632_v30 = vrot.slane %v631_v29, 2 }
 0x18f   : > { %v633_v31 = vadd.f32 %v632_v30, %v631_v29 }
 0x191   : > { %v634_v32 = vrot.slane %v633_v31, 1 }
 0x193   : > { %v635_v33 = vadd.f32 %v634_v32, %v633_v31 }
 0x195   : > { %3548 = vpush %v635_v33  ;;  %v3777_v33 = vmov 0.0  }
 0x1c6   : > { %s3549_s26 = spop %3548 }
 0x1c7   : > { %v637_v34 = vstv %s3549_s26  ;;  %s3946_s26 = scalar_lea.vmem %s4272_s5, %s3546_s15  ;;  %s3967_s15 = scalar_lea.vmem %s4273_s6, %s3547_s13 }
 0x1c8   : > { %v639_v35 = vmul.f32 0.00024414063, %v637_v34  ;;  %v2954_v20 = vld [vmem:[%s3946_s26 + $0x30] sm:$0xff]  ;;  %s3781_s13 = smov 126  }
 0x1c9   : > { %3236 = vmatprep.mubr.msk.f32.mxu0 %vm757_vm1, %v2954_v20  ;;  %v745_v20 = vld [vmem:[%s3946_s26 + $0x8] sm:$0xff] }
 0x1ca   : > { %v640_v36 = vsub.f32 %v3908_v18, %v639_v35  ;;  %v641_v37 = vsub.f32 %v3906_v17, %v639_v35  ;;  %v642_v38 = vsub.f32 %v3912_v23, %v639_v35  ;;  %v643_v39 = vsub.f32 %v3914_v24, %v639_v35 }
 0x1cc   : > { %v644_v40 = vmul.f32 %v640_v36, %v640_v36  ;;  %v645_v41 = vmul.f32 %v641_v37, %v641_v37  ;;  %v646_v42 = vmul.f32 %v642_v38, %v642_v38  ;;  %v647_v44 = vmul.f32 %v643_v39, %v643_v39 }
 0x1ce   : > { %v648_v43 = vadd.f32 %v645_v41, %v644_v40 }
 0x1d0   : > { %v649_v45 = vadd.f32 %v648_v43, %v646_v42  ;;  %v2955_v42 = vld [vmem:[%s3946_s26 + $0x38] sm:$0xff]  ;;  %v2956_v43 = vld [vmem:[%s3946_s26 + $0x40] sm:$0xff] }
 0x1d2   : > { %v650_v46 = vadd.f32 %v649_v45, %v647_v44 }
 0x1d4   : > { %651 = vadd.xlane.f32.xlu1 %v650_v46  ;;  %v2957_v46 = vld [vmem:[%s3946_s26 + $0x48] sm:$0xff] }
 0x261   : > { %v652_v47 = vpop.xlane.xlu1 %651 }
 0x262   : > { %v653_v48 = vrot.slane %v652_v47, 4 }
 0x264   : > { %v654_v49 = vadd.f32 %v653_v48, %v652_v47  ;;  %v2958_v47 = vld [vmem:[%s3946_s26 + $0x50] sm:$0xff]  ;;  %v1185_v48 = vld [vmem:[%s3967_s15 + $0x8] sm:$0xff] }
 0x266   : > { %v655_v50 = vrot.slane %v654_v49, 2 }
 0x268   : > { %v656_v51 = vadd.f32 %v655_v50, %v654_v49  ;;  %v1184_v49 = vld [vmem:[%s3967_s15] sm:$0xff]  ;;  %v2959_v50 = vld [vmem:[%s3946_s26 + $0x58] sm:$0xff] }
 0x26a   : > { %v657_v52 = vrot.slane %v656_v51, 1 }
 0x26c   : > { %v658_v53 = vadd.f32 %v657_v52, %v656_v51  ;;  %v744_v51 = vld [vmem:[%s3946_s26] sm:$0xff]  ;;  %v2989_v52 = vld [vmem:[%s3893_s25 + $0x28] sm:$0xff] }
 0x26e   : > { %3550 = vpush %v658_v53  ;;  %v2988_v53 = vld [vmem:[%s3893_s25 + $0x20] sm:$0xff] }
 0x29f   : > { %s3551_s12 = spop %3550 }
 0x2a0   : > { %v660_v54 = vstv %s3551_s12  ;;  %s3778_s12 = smov 1  }
 0x2a1   : > { %v661_v55 = vmul.f32 0.00024414063, %v660_v54  ;;  %v2991_v54 = vld [vmem:[%s3893_s25 + $0x38] sm:$0xff] }
 0x2a3   : > { %v666_v56 = vadd.f32 1e-12, %v661_v55  ;;  %v2990_v55 = vld [vmem:[%s3893_s25 + $0x30] sm:$0xff] }
 0x2a5   : > { %3730 = vrsqrt.f32 %v666_v56 }
 0x2af   : > { %v3731_v59 = vpop.eup %3730 }
 0x2b0   : > { %v669_v60 = vmul.f32 %v3731_v59, %v663_v57  ;;  %v668_v61 = vmul.f32 %v3731_v59, %v662_v58  ;;  %v671_v0 = vmul.f32 %v3731_v59, %v665_v62  ;;  %v670_v3 = vmul.f32 %v3731_v59, %v664_v63 }
 0x2b2   : > { %691 = vperm.xlu1 %3609, %v669_v60   ;;  %686 = vperm.xlu0 %3608, %v668_v61   ;;  %v677_v4 = vmul.f32 %v669_v60, %v639_v35  ;;  %v676_v5 = vmul.f32 %v668_v61, %v639_v35  ;;  %v679_v10 = vmul.f32 %v671_v0, %v639_v35 }
 0x2b3   : > { %v678_v11 = vmul.f32 %v670_v3, %v639_v35 }
 0x2b4   : > { %v681_v8 = vsub.f32 %v673_v6, %v677_v4  ;;  %v680_v9 = vsub.f32 %v672_v7, %v676_v5  ;;  %v683_v14 = vsub.f32 %v675_v12, %v679_v10 }
 0x2b5   : > { %v682_v15 = vsub.f32 %v674_v13, %v678_v11 }
 0x2b6   : > { %701 = vperm.xlu1 %3609, %v671_v0   ;;  %696 = vperm.xlu0 %3608, %v670_v3  }
 0x2ba   : > { %715 = vperm.xlu1 %3609, %v681_v8   ;;  %710 = vperm.xlu0 %3608, %v680_v9  }
 0x2be   : > { %725 = vperm.xlu1 %3609, %v683_v14   ;;  %720 = vperm.xlu0 %3608, %v682_v15  }
 0x331   : > { %v692_v16 = vpop.permute.xlu1 %691  ;;  %v687_v19 = vpop.permute.xlu0 %686 }
 0x332   : > { %v705_v25 = vmul.f32 %v692_v16, %v3906_v17  ;;  %v704_v26 = vmul.f32 %v687_v19, %v3908_v18 }
 0x335   : > { %v702_v21 = vpop.permute.xlu1 %701  ;;  %v697_v22 = vpop.permute.xlu0 %696 }
 0x336   : > { %v707_v31 = vmul.f32 %v702_v21, %v3914_v24  ;;  %v706_v32 = vmul.f32 %v697_v22, %v3912_v23 }
 0x339   : > { %v716_v27 = vpop.permute.xlu1 %715  ;;  %v711_v28 = vpop.permute.xlu0 %710 }
 0x33a   : > { %v729_v29 = vadd.f32 %v716_v27, %v705_v25  ;;  %v728_v30 = vadd.f32 %v711_v28, %v704_v26  ;;  %v746_v28 = vld [vmem:[%s3946_s26 + $0x10] sm:$0xff] }
 0x33c   : > { %v3615_v34 = vpack.i.bf16 %v729_v29, %v3777_v33  ;;  %v3610_v35 = vpack.i.bf16 %v728_v30, %v3777_v33  ;;  %v3405_v36 = vpack.c.bf16 %v729_v29, %v728_v30  ;;  %v3635_v40 = vpack.i.bf16 %v3777_v33, %v729_v29 }
 0x33d   : > { %v726_v37 = vpop.permute.xlu1 %725  ;;  %v721_v38 = vpop.permute.xlu0 %720  ;;  %v3630_v41 = vpack.i.bf16 %v3777_v33, %v728_v30 }
 0x33e   : > { %v731_v17 = vadd.f32 %v726_v37, %v707_v31  ;;  %v730_v39 = vadd.f32 %v721_v38, %v706_v32  ;;  %3616 = vrot.lane.b32.xlu1 %v3615_v34, %s3778_s12  ;;  %3611 = vrot.lane.b32.xlu0 %v3610_v35, %s3778_s12  ;;  %v747_v34 = vld [vmem:[%s3946_s26 + $0x18] sm:$0xff]  ;;  %v748_v38 = vld [vmem:[%s3946_s26 + $0x20] sm:$0xff] }
 0x33f   : > { %3406 = vmatprep.subr.bf16.mxu0 %v3405_v36 }
 0x340   : > { %3408 = vmatpush3.bf16.msra.mxu0 %v3405_v36  ;;  %v3625_v18 = vpack.i.bf16 %v731_v17, %v3777_v33  ;;  %v3620_v23 = vpack.i.bf16 %v730_v39, %v3777_v33  ;;  %v3409_v24 = vpack.c.bf16 %v731_v17, %v730_v39  ;;  %v3645_v44 = vpack.i.bf16 %v3777_v33, %v731_v17  ;;  %v749_v17 = vld [vmem:[%s3946_s26 + $0x28] sm:$0xff] }
 0x341   : > { %v3640_v45 = vpack.i.bf16 %v3777_v33, %v730_v39  ;;  %v2972_v39 = vld [vmem:[%s3946_s26 + $0x60] sm:$0xff] }
 0x342   : > { %3626 = vrot.lane.b32.xlu1 %v3625_v18, %s3778_s12  ;;  %3621 = vrot.lane.b32.xlu0 %v3620_v23, %s3778_s12  ;;  %v2973_v18 = vld [vmem:[%s3946_s26 + $0x68] sm:$0xff]  ;;  %v2974_v23 = vld [vmem:[%s3946_s26 + $0x70] sm:$0xff]  ;;  %s3780_s12 = smov 2  }
 0x343   : > { %3410 = vmatprep.subr.bf16.mxu0 %v3409_v24 }
 0x344   : > { %3412 = vmatpush3.bf16.msra.mxu0 %v3409_v24  ;;  %v2975_v24 = vld [vmem:[%s3946_s26 + $0x78] sm:$0xff] }
 0x346   : > { %3636 = vrot.lane.b32.xlu1 %v3635_v40, %s3779_s17  ;;  %3631 = vrot.lane.b32.xlu0 %v3630_v41, %s3779_s17  ;;  %v2976_v40 = vld [vmem:[%s3946_s26 + $0x80] sm:$0xff]  ;;  %v2977_v41 = vld [vmem:[%s3946_s26 + $0x88] sm:$0xff] }
 0x347   : > { %3237 = vmatmul.mubr.msk.f32.vlgmr.msra.gmra.mrb[4].mxu0 %vm757_vm1, %v2955_v42  ;;  %v2984_v42 = vld [vmem:[%s3886_s22 + $0x20] sm:$0xff] }
 0x348   : > { %3239 = vmatprep.mubr.msk.f32.mxu0 %vm757_vm1, %v2956_v43 }
 0x34a   : > { %3646 = vrot.lane.b32.xlu1 %v3645_v44, %s3779_s17  ;;  %3641 = vrot.lane.b32.xlu0 %v3640_v45, %s3779_s17  ;;  %s2948_s17 = sshll.u32 %s4287_s28, 3 }
 0x34b   : > { %3240 = vmatmul.mubr.msk.f32.gmra.mrb[6].mxu0 %vm757_vm1, %v2957_v46 }
 0x34c   : > { %3242 = vmatprep.mubr.msk.f32.mxu0 %vm757_vm1, %v2958_v47 }
 0x34e   : > { %1197 = vperm.xlu1 %3609, %v1185_v48   ;;  %1192 = vperm.xlu0 %3608, %v1184_v49  }
 0x34f   : > { %3243 = vmatmul.mubr.msk.f32.gmra.mrb[8].mxu0 %vm757_vm1, %v2959_v50 }
 0x350   : > { %3253 = vmatprep.mubr.msk.f32.mxu0 %vm757_vm1, %v744_v51 }
 0x352   : > { %1249 = vperm.xlu1 %3609, %v2989_v52   ;;  %1244 = vperm.xlu0 %3608, %v2988_v53  }
 0x356   : > { %1259 = vperm.xlu1 %3609, %v2991_v54   ;;  %1254 = vperm.xlu0 %3608, %v2990_v55  }
 0x3b0   : > { %v3617_v56 = vpop.permute.xlu1 %3616  ;;  %v3612_v57 = vpop.permute.xlu0 %3611 }
 0x3b1   : > { %v3619_v58 = vunpack.i.h.bf16 %v3617_v56  ;;  %v3618_v59 = vunpack.i.l.bf16 %v3617_v56  ;;  %v3614_v60 = vunpack.i.h.bf16 %v3612_v57  ;;  %v3613_v61 = vunpack.i.l.bf16 %v3612_v57  ;;  %v2985_v56 = vld [vmem:[%s3886_s22 + $0x28] sm:$0xff]  ;;  %v2986_v57 = vld [vmem:[%s3886_s22 + $0x30] sm:$0xff] }
 0x3b3   : > { %v896_v62 = vsel %vm895_vm2, %v3613_v61, %v3614_v60  ;;  %v897_v63 = vsel %vm895_vm2, %v3618_v59, %v3619_v58 }
 0x3b4   : > { %v3627_v0 = vpop.permute.xlu1 %3626  ;;  %v3622_v3 = vpop.permute.xlu0 %3621  ;;  %v3413_v4 = vpack.c.bf16 %v897_v63, %v896_v62 }
 0x3b5   : > { %v3629_v5 = vunpack.i.h.bf16 %v3627_v0  ;;  %v3628_v6 = vunpack.i.l.bf16 %v3627_v0  ;;  %v3624_v7 = vunpack.i.h.bf16 %v3622_v3  ;;  %v3623_v8 = vunpack.i.l.bf16 %v3622_v3 }
 0x3b6   : > { %3414 = vmatprep.subr.bf16.mxu0 %v3413_v4 }
 0x3b7   : > { %3416 = vmatpush3.bf16.msra.mxu0 %v3413_v4  ;;  %v898_v9 = vsel %vm895_vm2, %v3623_v8, %v3624_v7  ;;  %v899_v10 = vsel %vm895_vm2, %v3628_v6, %v3629_v5 }
 0x3b8   : > { %v3637_v11 = vpop.permute.xlu1 %3636  ;;  %v3632_v12 = vpop.permute.xlu0 %3631  ;;  %v3417_v13 = vpack.c.bf16 %v899_v10, %v898_v9 }
 0x3b9   : > { %v3639_v14 = vunpack.i.h.bf16 %v3637_v11  ;;  %v3638_v15 = vunpack.i.l.bf16 %v3637_v11  ;;  %v3634_v16 = vunpack.i.h.bf16 %v3632_v12  ;;  %v3633_v19 = vunpack.i.l.bf16 %v3632_v12 }
 0x3ba   : > { %3418 = vmatprep.subr.bf16.mxu0 %v3417_v13 }
 0x3bb   : > { %3420 = vmatpush3.bf16.msra.mxu0 %v3417_v13  ;;  %v1057_v21 = vsel %vm1056_vm3, %v3633_v19, %v3634_v16  ;;  %v1058_v22 = vsel %vm1056_vm3, %v3638_v15, %v3639_v14 }
 0x3bc   : > { %v3647_v25 = vpop.permute.xlu1 %3646  ;;  %v3642_v26 = vpop.permute.xlu0 %3641  ;;  %v3421_v27 = vpack.c.bf16 %v1058_v22, %v1057_v21 }
 0x3bd   : > { %v3649_v29 = vunpack.i.h.bf16 %v3647_v25  ;;  %v3648_v30 = vunpack.i.l.bf16 %v3647_v25  ;;  %v3644_v31 = vunpack.i.h.bf16 %v3642_v26  ;;  %v3643_v32 = vunpack.i.l.bf16 %v3642_v26 }
 0x3be   : > { %3254 = vmatmul.mubr.msk.f32.vlgmr.msra.gmra.mrb[4].mxu0 %vm757_vm1, %v745_v20  ;;  %3422 = vmatprep.subr.bf16.mxu0 %v3421_v27 }
 0x3bf   : > { %3424 = vmatpush3.bf16.msra.mxu0 %v3421_v27  ;;  %3256 = vmatprep.mubr.msk.f32.mxu0 %vm757_vm1, %v746_v28  ;;  %v1059_v35 = vsel %vm1056_vm3, %v3643_v32, %v3644_v31  ;;  %v1060_v36 = vsel %vm1056_vm3, %v3648_v30, %v3649_v29 }
 0x3c0   : > { %v3425_v37 = vpack.c.bf16 %v1060_v36, %v1059_v35 }
 0x3c2   : > { %3257 = vmatmul.mubr.msk.f32.gmra.mrb[6].mxu0 %vm757_vm1, %v747_v34  ;;  %3426 = vmatprep.subr.bf16.mxu0 %v3425_v37 }
 0x3c3   : > { %3428 = vmatpush3.bf16.msra.mxu0 %v3425_v37  ;;  %3259 = vmatprep.mubr.msk.f32.mxu0 %vm757_vm1, %v748_v38 }
 0x3c6   : > { %3260 = vmatmul.mubr.msk.f32.gmra.mrb[8].mxu0 %vm757_vm1, %v749_v17 }
 0x3c7   : > { %3270 = vmatprep.mubr.msk.f32.mxu0 %vm757_vm1, %v2972_v39 }
 0x3ca   : > { %3271 = vmatmul.mubr.msk.f32.vlgmr.msra.gmra.mrb[4].mxu0 %vm757_vm1, %v2973_v18 }
 0x3cb   : > { %3273 = vmatprep.mubr.msk.f32.mxu0 %vm757_vm1, %v2974_v23 }
 0x3cd   : > { %v1198_v43 = vpop.permute.xlu1 %1197  ;;  %v1193_v45 = vpop.permute.xlu0 %1192 }
 0x3ce   : > { %3274 = vmatmul.mubr.msk.f32.gmra.mrb[6].mxu0 %vm757_vm1, %v2975_v24 }
 0x3cf   : > { %3276 = vmatprep.mubr.msk.f32.mxu0 %vm757_vm1, %v2976_v40 }
 0x3d1   : > { %v1250_v59 = vpop.permute.xlu1 %1249 }
 0x3d2   : > { %3277 = vmatmul.mubr.msk.f32.gmra.mrb[8].mxu0 %vm757_vm1, %v2977_v41  ;;  %v2997_v41 = vld [vmem:[%s3926_s18 + $0x28] sm:$0xff] }
 0x3d3   : > { %3283 = vmatprep.mubr.msk.f32.mxu0 %vm527_vm0, %v2984_v42  ;;  %v2996_v42 = vld [vmem:[%s3926_s18 + $0x20] sm:$0xff] }
 0x3d5   : > { %v1260_v6 = vpop.permute.xlu1 %1259 }
 0x49d   : > { %v3272_v44 = vpop.f32.mrb[4].mxu0 }
 0x49e   : > { %v1221_v46 = vadd.f32 %v3272_v44, %v1198_v43  ;;  %v1149_v47 = vpop.f32.mrb[5].mxu0 }
 0x49f   : > { %v1220_v48 = vadd.f32 %v1193_v45, %v1149_v47  ;;  %v2998_v47 = vld [vmem:[%s3926_s18 + $0x30] sm:$0xff] }
 0x4a0   : > { %v4019_v49 = vadd.f32 %v1221_v46, %v3878_v2  ;;  %v1245_v2 = vpop.permute.xlu0 %1244  ;;  %v2999_v46 = vld [vmem:[%s3926_s18 + $0x38] sm:$0xff] }
 0x4a1   : > { %v4022_v50 = vadd.f32 %v1220_v48, %v3876_v1  ;;  %v4024_v51 = vpop.f32.mrb[6].mxu0  ;;  %v2987_v1 = vld [vmem:[%s3886_s22 + $0x38] sm:$0xff] }
 0x4a2   : > { %v4026_v52 = vpop.f32.mrb[7].mxu0 }
 0x4a3   : > { %v3429_v53 = vpack.c.bf16 %v4019_v49, %v4022_v50 }
 0x4a4   : > { %v1255_v0 = vpop.permute.xlu0 %1254 }
 0x4a5   : > { %v4030_v54 = vpop.f32.mrb[8].mxu0  ;;  %3430 = vmatprep.subr.bf16.mxu0 %v3429_v53 }
 0x4a6   : > { %v4032_v55 = vpop.f32.mrb[9].mxu0  ;;  %3432 = vmatpush3.bf16.msra.mxu0 %v3429_v53 }
 0x4a9   : > { %3284 = vmatmul.mubr.msk.f32.vlgmr.msra.gmra.mrb[10].mxu0 %vm527_vm0, %v2985_v56 }
 0x4aa   : > { %3286 = vmatprep.mubr.msk.f32.mxu0 %vm527_vm0, %v2986_v57 }
 0x4ad   : > { %3287 = vmatmul.mubr.msk.f32.gmra.mrb[12].mxu0 %vm527_vm0, %v2987_v1  ;;  %v3001_v1 = vld [vmem:[%s3936_s21 + $0x28] sm:$0xff] }
 0x57c   : > { %v3285_v58 = vpop.f32.mrb[10].mxu0 }
 0x57d   : > { %v1340_v60 = vpop.f32.mrb[11].mxu0  ;;  %v4040_v61 = vadd.f32 %v3285_v58, %v1250_v59 }
 0x57e   : > { %v4042_v62 = vadd.f32 %v1340_v60, %v1245_v2  ;;  %v3000_v2 = vld [vmem:[%s3936_s21 + $0x20] sm:$0xff] }
 0x580   : > { %v3288_v63 = vpop.f32.mrb[12].mxu0  ;;  %v1359_v4 = vadd.f32 %v4040_v61, %v4042_v62 }
 0x581   : > { %v1350_v3 = vpop.f32.mrb[13].mxu0  ;;  %v4048_v7 = vadd.f32 %v3288_v63, %v1260_v6 }
 0x582   : > { %v4046_v5 = vadd.f32 %v1350_v3, %v1255_v0  ;;  %v3003_v0 = vld [vmem:[%s3936_s21 + $0x38] sm:$0xff]  ;;  %v3002_v3 = vld [vmem:[%s3936_s21 + $0x30] sm:$0xff] }
 0x584   : > { %v1360_v8 = vadd.f32 %v1359_v4, %v4046_v5 }
 0x586   : > { %v1361_v9 = vadd.f32 %v1360_v8, %v4048_v7 }
 0x588   : > { %1362 = vadd.xlane.f32.xlu0 %v1361_v9 }
 0x615   : > { %v1363_v10 = vpop.xlane.xlu0 %1362 }
 0x616   : > { %v1364_v11 = vrot.slane %v1363_v10, 4 }
 0x618   : > { %v1365_v12 = vadd.f32 %v1364_v11, %v1363_v10  ;;  %v3010_v10 = vld [vmem:[%s3946_s26 + $0xc0] sm:$0xff] }
 0x619   : > { %3297 = vmatprep.mubr.msk.f32.mxu1 %vm757_vm1, %v3010_v10 }
 0x61a   : > { %v1366_v13 = vrot.slane %v1365_v12, 2 }
 0x61c   : > { %v1367_v14 = vadd.f32 %v1366_v13, %v1365_v12 }
 0x61e   : > { %v1368_v15 = vrot.slane %v1367_v14, 1 }
 0x620   : > { %v1369_v16 = vadd.f32 %v1368_v15, %v1367_v14 }
 0x622   : > { %3552 = vpush %v1369_v16 }
 0x653   : > { %s3553_s23 = spop %3552 }
 0x654   : > { %v1371_v19 = vstv %s3553_s23 }
 0x655   : > { %v1372_v20 = vmul.f32 0.00024414063, %v1371_v19 }
 0x657   : > { %v1373_v21 = vsub.f32 %v4042_v62, %v1372_v20  ;;  %v1374_v22 = vsub.f32 %v4040_v61, %v1372_v20  ;;  %v1375_v25 = vsub.f32 %v4046_v5, %v1372_v20  ;;  %v1376_v26 = vsub.f32 %v4048_v7, %v1372_v20 }
 0x659   : > { %v1377_v27 = vmul.f32 %v1373_v21, %v1373_v21  ;;  %v1378_v28 = vmul.f32 %v1374_v22, %v1374_v22  ;;  %v1379_v29 = vmul.f32 %v1375_v25, %v1375_v25  ;;  %v1380_v31 = vmul.f32 %v1376_v26, %v1376_v26 }
 0x65b   : > { %v1381_v30 = vadd.f32 %v1378_v28, %v1377_v27 }
 0x65d   : > { %v1382_v32 = vadd.f32 %v1381_v30, %v1379_v29 }
 0x65f   : > { %v1383_v34 = vadd.f32 %v1382_v32, %v1380_v31 }
 0x661   : > { %1384 = vadd.xlane.f32.xlu1 %v1383_v34  ;;  %v3011_v34 = vld [vmem:[%s3946_s26 + $0xc8] sm:$0xff] }
 0x6ee   : > { %v1385_v35 = vpop.xlane.xlu1 %1384 }
 0x6ef   : > { %v1386_v36 = vrot.slane %v1385_v35, 4 }
 0x6f1   : > { %v1387_v37 = vadd.f32 %v1386_v36, %v1385_v35  ;;  %v3012_v35 = vld [vmem:[%s3946_s26 + $0xd0] sm:$0xff] }
 0x6f3   : > { %v1388_v38 = vrot.slane %v1387_v37, 2 }
 0x6f5   : > { %v1389_v17 = vadd.f32 %v1388_v38, %v1387_v37  ;;  %v3013_v38 = vld [vmem:[%s3946_s26 + $0xd8] sm:$0xff] }
 0x6f7   : > { %v1390_v39 = vrot.slane %v1389_v17, 1 }
 0x6f9   : > { %v1391_v18 = vadd.f32 %v1390_v39, %v1389_v17  ;;  %v3014_v17 = vld [vmem:[%s3946_s26 + $0xe0] sm:$0xff]  ;;  %v3041_v39 = vld [vmem:[%s3967_s15 + $0x38] sm:$0xff] }
 0x6fb   : > { %3554 = vpush %v1391_v18  ;;  %v3040_v18 = vld [vmem:[%s3967_s15 + $0x30] sm:$0xff] }
 0x72c   : > { %s3555_s24 = spop %3554 }
 0x72d   : > { %v1393_v23 = vstv %s3555_s24  ;;  %s475_s24 = scalar_lea.vmem %s4274_s7, %s2937_s16 }
 0x72e   : > { %v1394_v24 = vmul.f32 0.00024414063, %v1393_v23  ;;  %v3015_v23 = vld [vmem:[%s3946_s26 + $0xe8] sm:$0xff] }
 0x730   : > { %v1400_v40 = vadd.f32 1e-12, %v1394_v24  ;;  %v3004_v24 = vld [vmem:[%s3946_s26 + $0x90] sm:$0xff] }
 0x732   : > { %3732 = vrsqrt.f32 %v1400_v40  ;;  %v3051_v40 = vld [vmem:[%s3893_s25 + $0x48] sm:$0xff] }
 0x73c   : > { %v3733_v43 = vpop.eup %3732 }
 0x73d   : > { %v1403_v44 = vmul.f32 %v3733_v43, %v2997_v41  ;;  %v1402_v45 = vmul.f32 %v3733_v43, %v2996_v42  ;;  %v1405_v48 = vmul.f32 %v3733_v43, %v2999_v46  ;;  %v1404_v53 = vmul.f32 %v3733_v43, %v2998_v47  ;;  %v3050_v41 = vld [vmem:[%s3893_s25 + $0x40] sm:$0xff]  ;;  %v3053_v42 = vld [vmem:[%s3893_s25 + $0x58] sm:$0xff]  ;;  %v3052_v43 = vld [vmem:[%s3893_s25 + $0x50] sm:$0xff] }
 0x73f   : > { %1426 = vperm.xlu1 %3609, %v1403_v44   ;;  %1421 = vperm.xlu0 %3608, %v1402_v45   ;;  %v1412_v56 = vmul.f32 %v1403_v44, %v1372_v20  ;;  %v1411_v57 = vmul.f32 %v1402_v45, %v1372_v20  ;;  %v1414_v60 = vmul.f32 %v1405_v48, %v1372_v20 }
 0x740   : > { %v1413_v63 = vmul.f32 %v1404_v53, %v1372_v20 }
 0x741   : > { %v1416_v58 = vsub.f32 %v3001_v1, %v1412_v56  ;;  %v1415_v59 = vsub.f32 %v3000_v2, %v1411_v57  ;;  %v1418_v4 = vsub.f32 %v3003_v0, %v1414_v60 }
 0x742   : > { %v1417_v6 = vsub.f32 %v3002_v3, %v1413_v63 }
 0x743   : > { %1436 = vperm.xlu1 %3609, %v1405_v48   ;;  %1431 = vperm.xlu0 %3608, %v1404_v53  }
 0x747   : > { %1450 = vperm.xlu1 %3609, %v1416_v58   ;;  %1445 = vperm.xlu0 %3608, %v1415_v59  }
 0x74b   : > { %1460 = vperm.xlu1 %3609, %v1418_v4   ;;  %1455 = vperm.xlu0 %3608, %v1417_v6  }
 0x7be   : > { %v1427_v8 = vpop.permute.xlu1 %1426  ;;  %v1422_v9 = vpop.permute.xlu0 %1421 }
 0x7bf   : > { %v1440_v13 = vmul.f32 %v1427_v8, %v4040_v61  ;;  %v1439_v14 = vmul.f32 %v1422_v9, %v4042_v62 }
 0x7c2   : > { %v1437_v11 = vpop.permute.xlu1 %1436  ;;  %v1432_v12 = vpop.permute.xlu0 %1431 }
 0x7c3   : > { %v1442_v21 = vmul.f32 %v1437_v11, %v4048_v7  ;;  %v1441_v22 = vmul.f32 %v1432_v12, %v4046_v5 }
 0x7c6   : > { %v1451_v15 = vpop.permute.xlu1 %1450  ;;  %v1446_v16 = vpop.permute.xlu0 %1445 }
 0x7c7   : > { %v1464_v19 = vadd.f32 %v1451_v15, %v1440_v13  ;;  %v1463_v20 = vadd.f32 %v1446_v16, %v1439_v14  ;;  %v3005_v14 = vld [vmem:[%s3946_s26 + $0x98] sm:$0xff] }
 0x7c9   : > { %v3655_v25 = vpack.i.bf16 %v1464_v19, %v3777_v33  ;;  %v3650_v26 = vpack.i.bf16 %v1463_v20, %v3777_v33  ;;  %v3433_v27 = vpack.c.bf16 %v1464_v19, %v1463_v20  ;;  %v3675_v31 = vpack.i.bf16 %v3777_v33, %v1464_v19 }
 0x7ca   : > { %v1461_v28 = vpop.permute.xlu1 %1460  ;;  %v1456_v29 = vpop.permute.xlu0 %1455  ;;  %v3670_v32 = vpack.i.bf16 %v3777_v33, %v1463_v20 }
 0x7cb   : > { %v1466_v30 = vadd.f32 %v1461_v28, %v1442_v21  ;;  %v1465_v61 = vadd.f32 %v1456_v29, %v1441_v22  ;;  %3656 = vrot.lane.b32.xlu1 %v3655_v25, %s3780_s12  ;;  %3651 = vrot.lane.b32.xlu0 %v3650_v26, %s3780_s12  ;;  %v3006_v22 = vld [vmem:[%s3946_s26 + $0xa0] sm:$0xff]  ;;  %v3007_v29 = vld [vmem:[%s3946_s26 + $0xa8] sm:$0xff] }
 0x7cc   : > { %3434 = vmatprep.subr.bf16.mxu1 %v3433_v27 }
 0x7cd   : > { %3436 = vmatpush3.bf16.msra.mxu1 %v3433_v27  ;;  %v3665_v62 = vpack.i.bf16 %v1466_v30, %v3777_v33  ;;  %v3660_v5 = vpack.i.bf16 %v1465_v61, %v3777_v33  ;;  %v3437_v7 = vpack.c.bf16 %v1466_v30, %v1465_v61  ;;  %v3685_v36 = vpack.i.bf16 %v3777_v33, %v1466_v30 }
 0x7ce   : > { %v3680_v37 = vpack.i.bf16 %v3777_v33, %v1465_v61 }
 0x7cf   : > { %3666 = vrot.lane.b32.xlu1 %v3665_v62, %s3780_s12  ;;  %3661 = vrot.lane.b32.xlu0 %v3660_v5, %s3780_s12  ;;  %v3008_v5 = vld [vmem:[%s3946_s26 + $0xb0] sm:$0xff] }
 0x7d0   : > { %3438 = vmatprep.subr.bf16.mxu1 %v3437_v7 }
 0x7d1   : > { %3440 = vmatpush3.bf16.msra.mxu1 %v3437_v7  ;;  %v3009_v7 = vld [vmem:[%s3946_s26 + $0xb8] sm:$0xff] }
 0x7d3   : > { %3676 = vrot.lane.b32.xlu1 %v3675_v31, %s3781_s13  ;;  %3671 = vrot.lane.b32.xlu0 %v3670_v32, %s3781_s13  ;;  %v3028_v31 = vld [vmem:[%s3946_s26 + $0xf0] sm:$0xff]  ;;  %v3029_v32 = vld [vmem:[%s3946_s26 + $0xf8] sm:$0xff] }
 0x7d4   : > { %3298 = vmatmul.mubr.msk.f32.vlgmr.msra.gmra.mrb[0].mxu1 %vm757_vm1, %v3011_v34  ;;  %v3046_v34 = vld [vmem:[%s3886_s22 + $0x40] sm:$0xff] }
 0x7d5   : > { %3300 = vmatprep.mubr.msk.f32.mxu1 %vm757_vm1, %v3012_v35  ;;  %3344 = vmatprep.mubr.msk.f32.mxu0 %vm527_vm0, %v3046_v34  ;;  %v3058_v34 = vld [vmem:[%s3926_s18 + $0x40] sm:$0xff] }
 0x7d7   : > { %3686 = vrot.lane.b32.xlu1 %v3685_v36, %s3781_s13  ;;  %3681 = vrot.lane.b32.xlu0 %v3680_v37, %s3781_s13 }
 0x7d8   : > { %3301 = vmatmul.mubr.msk.f32.gmra.mrb[2].mxu1 %vm757_vm1, %v3013_v38 }
 0x7d9   : > { %3303 = vmatprep.mubr.msk.f32.mxu1 %vm757_vm1, %v3014_v17 }
 0x7db   : > { %1933 = vperm.xlu1 %3609, %v3041_v39   ;;  %1928 = vperm.xlu0 %3608, %v3040_v18  }
 0x7dc   : > { %3304 = vmatmul.mubr.msk.f32.gmra.mrb[4].mxu1 %vm757_vm1, %v3015_v23 }
 0x7dd   : > { %3314 = vmatprep.mubr.msk.f32.mxu1 %vm757_vm1, %v3004_v24 }
 0x7df   : > { %1985 = vperm.xlu1 %3609, %v3051_v40   ;;  %1980 = vperm.xlu0 %3608, %v3050_v41   ;;  %v3047_v40 = vld [vmem:[%s3886_s22 + $0x48] sm:$0xff]  ;;  %v3048_v41 = vld [vmem:[%s3886_s22 + $0x50] sm:$0xff] }
 0x7e3   : > { %1995 = vperm.xlu1 %3609, %v3053_v42   ;;  %1990 = vperm.xlu0 %3608, %v3052_v43   ;;  %v3049_v42 = vld [vmem:[%s3886_s22 + $0x58] sm:$0xff] }
 0x83d   : > { %v3657_v44 = vpop.permute.xlu1 %3656  ;;  %v3652_v45 = vpop.permute.xlu0 %3651 }
 0x83e   : > { %v3659_v46 = vunpack.i.h.bf16 %v3657_v44  ;;  %v3658_v47 = vunpack.i.l.bf16 %v3657_v44  ;;  %v3654_v48 = vunpack.i.h.bf16 %v3652_v45  ;;  %v3653_v53 = vunpack.i.l.bf16 %v3652_v45 }
 0x840   : > { %v1631_v56 = vsel %vm1630_vm4, %v3653_v53, %v3654_v48  ;;  %v1632_v57 = vsel %vm1630_vm4, %v3658_v47, %v3659_v46 }
 0x841   : > { %v3667_v1 = vpop.permute.xlu1 %3666  ;;  %v3662_v2 = vpop.permute.xlu0 %3661  ;;  %v3441_v58 = vpack.c.bf16 %v1632_v57, %v1631_v56 }
 0x842   : > { %v3669_v59 = vunpack.i.h.bf16 %v3667_v1  ;;  %v3668_v60 = vunpack.i.l.bf16 %v3667_v1  ;;  %v3664_v63 = vunpack.i.h.bf16 %v3662_v2  ;;  %v3663_v0 = vunpack.i.l.bf16 %v3662_v2 }
 0x843   : > { %3442 = vmatprep.subr.bf16.mxu1 %v3441_v58 }
 0x844   : > { %3444 = vmatpush3.bf16.msra.mxu1 %v3441_v58  ;;  %v1633_v3 = vsel %vm1630_vm4, %v3663_v0, %v3664_v63  ;;  %v1634_v4 = vsel %vm1630_vm4, %v3668_v60, %v3669_v59 }
 0x845   : > { %v3677_v6 = vpop.permute.xlu1 %3676  ;;  %v3672_v8 = vpop.permute.xlu0 %3671  ;;  %v3445_v9 = vpack.c.bf16 %v1634_v4, %v1633_v3 }
 0x846   : > { %v3679_v10 = vunpack.i.h.bf16 %v3677_v6  ;;  %v3678_v11 = vunpack.i.l.bf16 %v3677_v6  ;;  %v3674_v12 = vunpack.i.h.bf16 %v3672_v8  ;;  %v3673_v13 = vunpack.i.l.bf16 %v3672_v8 }
 0x847   : > { %3446 = vmatprep.subr.bf16.mxu1 %v3445_v9 }
 0x848   : > { %3448 = vmatpush3.bf16.msra.mxu1 %v3445_v9  ;;  %v1792_v15 = vsel %vm1791_vm5, %v3673_v13, %v3674_v12  ;;  %v1793_v16 = vsel %vm1791_vm5, %v3678_v11, %v3679_v10 }
 0x849   : > { %v3687_v19 = vpop.permute.xlu1 %3686  ;;  %v3682_v20 = vpop.permute.xlu0 %3681  ;;  %v3449_v21 = vpack.c.bf16 %v1793_v16, %v1792_v15 }
 0x84a   : > { %v3689_v25 = vunpack.i.h.bf16 %v3687_v19  ;;  %v3688_v26 = vunpack.i.l.bf16 %v3687_v19  ;;  %v3684_v27 = vunpack.i.h.bf16 %v3682_v20  ;;  %v3683_v28 = vunpack.i.l.bf16 %v3682_v20 }
 0x84b   : > { %3315 = vmatmul.mubr.msk.f32.vlgmr.msra.gmra.mrb[0].mxu1 %vm757_vm1, %v3005_v14  ;;  %3450 = vmatprep.subr.bf16.mxu1 %v3449_v21 }
 0x84c   : > { %3452 = vmatpush3.bf16.msra.mxu1 %v3449_v21  ;;  %3317 = vmatprep.mubr.msk.f32.mxu1 %vm757_vm1, %v3006_v22  ;;  %v1794_v30 = vsel %vm1791_vm5, %v3683_v28, %v3684_v27  ;;  %v1795_v61 = vsel %vm1791_vm5, %v3688_v26, %v3689_v25 }
 0x84d   : > { %v3453_v62 = vpack.c.bf16 %v1795_v61, %v1794_v30 }
 0x84f   : > { %3318 = vmatmul.mubr.msk.f32.gmra.mrb[2].mxu1 %vm757_vm1, %v3007_v29  ;;  %3454 = vmatprep.subr.bf16.mxu1 %v3453_v62 }
 0x850   : > { %3456 = vmatpush3.bf16.msra.mxu1 %v3453_v62  ;;  %3320 = vmatprep.mubr.msk.f32.mxu1 %vm757_vm1, %v3008_v5 }
 0x853   : > { %3321 = vmatmul.mubr.msk.f32.gmra.mrb[4].mxu1 %vm757_vm1, %v3009_v7 }
 0x854   : > { %3331 = vmatprep.mubr.msk.f32.mxu1 %vm757_vm1, %v3028_v31 }
 0x857   : > { %3332 = vmatmul.mubr.msk.f32.vlgmr.msra.gmra.mrb[0].mxu1 %vm757_vm1, %v3029_v32  ;;  %v3059_v32 = vld [vmem:[%s3926_s18 + $0x48] sm:$0xff] }
 0x85a   : > { %v1934_v35 = vpop.permute.xlu1 %1933  ;;  %v1929_v37 = vpop.permute.xlu0 %1928 }
 0x85e   : > { %v1981_v43 = vpop.permute.xlu0 %1980  ;;  %v1986_v44 = vpop.permute.xlu1 %1985 }
 0x862   : > { %v1991_v48 = vpop.permute.xlu0 %1990  ;;  %v1996_v1 = vpop.permute.xlu1 %1995 }
 0x92a   : > { %v3333_v36 = vpop.f32.mrb[0].mxu1 }
 0x92b   : > { %v1957_v38 = vadd.f32 %v3333_v36, %v1934_v35  ;;  %v1884_v17 = vpop.f32.mrb[1].mxu1 }
 0x92c   : > { %v1956_v39 = vadd.f32 %v1929_v37, %v1884_v17  ;;  %v3060_v17 = vld [vmem:[%s3926_s18 + $0x50] sm:$0xff] }
 0x92d   : > { %v4121_v18 = vadd.f32 %v1957_v38, %v4019_v49  ;;  %v3061_v38 = vld [vmem:[%s3926_s18 + $0x58] sm:$0xff]  ;;  %s3782_s18 = smov 4  }
 0x92e   : > { %v4124_v23 = vadd.f32 %v1956_v39, %v4022_v50 }
 0x930   : > { %v3457_v24 = vpack.c.bf16 %v4121_v18, %v4124_v23 }
 0x932   : > { %3458 = vmatprep.subr.bf16.mxu0 %v3457_v24 }
 0x933   : > { %3460 = vmatpush3.bf16.msra.mxu0 %v3457_v24 }
 0x936   : > { %3345 = vmatmul.mubr.msk.f32.vlgmr.msra.gmra.mrb[14].mxu0 %vm527_vm0, %v3047_v40 }
 0x937   : > { %3347 = vmatprep.mubr.msk.f32.mxu0 %vm527_vm0, %v3048_v41 }
 0x93a   : > { %3348 = vmatmul.mubr.msk.f32.gmra.mrb[16].mxu0 %vm527_vm0, %v3049_v42  ;;  %v3063_v42 = vld [vmem:[%s3936_s21 + $0x48] sm:$0xff] }
 0xa09   : > { %v3346_v49 = vpop.f32.mrb[14].mxu0 }
 0xa0a   : > { %v2076_v45 = vpop.f32.mrb[15].mxu0  ;;  %v4134_v50 = vadd.f32 %v3346_v49, %v1986_v44 }
 0xa0b   : > { %v4136_v46 = vadd.f32 %v2076_v45, %v1981_v43  ;;  %v3062_v43 = vld [vmem:[%s3936_s21 + $0x40] sm:$0xff] }
 0xa0d   : > { %v3349_v47 = vpop.f32.mrb[16].mxu0  ;;  %v2095_v56 = vadd.f32 %v4134_v50, %v4136_v46 }
 0xa0e   : > { %v2086_v53 = vpop.f32.mrb[17].mxu0  ;;  %v4142_v2 = vadd.f32 %v3349_v47, %v1996_v1 }
 0xa0f   : > { %v4140_v57 = vadd.f32 %v2086_v53, %v1991_v48  ;;  %v3065_v48 = vld [vmem:[%s3936_s21 + $0x58] sm:$0xff]  ;;  %v3064_v53 = vld [vmem:[%s3936_s21 + $0x50] sm:$0xff]  ;;  %s3783_s21 = smov 124  }
 0xa11   : > { %v2096_v58 = vadd.f32 %v2095_v56, %v4140_v57 }
 0xa13   : > { %v2097_v59 = vadd.f32 %v2096_v58, %v4142_v2  ;;  %v3030_v58 = vld [vmem:[%s3946_s26 + $0x100] sm:$0xff] }
 0xa14   : > { %3334 = vmatprep.mubr.msk.f32.mxu1 %vm757_vm1, %v3030_v58 }
 0xa15   : > { %2098 = vadd.xlane.f32.xlu0 %v2097_v59  ;;  %v3031_v59 = vld [vmem:[%s3946_s26 + $0x108] sm:$0xff] }
 0xa16   : > { %3335 = vmatmul.mubr.msk.f32.gmra.mrb[2].mxu1 %vm757_vm1, %v3031_v59 }
 0xaa2   : > { %v2099_v60 = vpop.xlane.xlu0 %2098 }
 0xaa3   : > { %v2100_v63 = vrot.slane %v2099_v60, 4 }
 0xaa5   : > { %v2101_v0 = vadd.f32 %v2100_v63, %v2099_v60  ;;  %v3032_v60 = vld [vmem:[%s3946_s26 + $0x110] sm:$0xff]  ;;  %v3033_v63 = vld [vmem:[%s3946_s26 + $0x118] sm:$0xff] }
 0xaa6   : > { %3337 = vmatprep.mubr.msk.f32.mxu1 %vm757_vm1, %v3032_v60 }
 0xaa7   : > { %v2102_v3 = vrot.slane %v2101_v0, 2  ;;  %3338 = vmatmul.mubr.msk.f32.gmra.mrb[4].mxu1 %vm757_vm1, %v3033_v63 }
 0xaa9   : > { %v2103_v4 = vadd.f32 %v2102_v3, %v2101_v0 }
 0xaab   : > { %v2104_v6 = vrot.slane %v2103_v4, 1 }
 0xaad   : > { %v2105_v8 = vadd.f32 %v2104_v6, %v2103_v4  ;;  %v3072_v4 = vld [vmem:[%s3946_s26 + $0x150] sm:$0xff] }
 0xaae   : > { %3358 = vmatprep.mubr.msk.f32.mxu1 %vm757_vm1, %v3072_v4 }
 0xaaf   : > { %3556 = vpush %v2105_v8 }
 0xae0   : > { %s3557_s22 = spop %3556 }
 0xae1   : > { %v2107_v9 = vstv %s3557_s22 }
 0xae2   : > { %v2108_v10 = vmul.f32 0.00024414063, %v2107_v9 }
 0xae4   : > { %v2109_v11 = vsub.f32 %v4136_v46, %v2108_v10  ;;  %v2110_v12 = vsub.f32 %v4134_v50, %v2108_v10  ;;  %v2111_v13 = vsub.f32 %v4140_v57, %v2108_v10  ;;  %v2112_v14 = vsub.f32 %v4142_v2, %v2108_v10 }
 0xae6   : > { %v2113_v15 = vmul.f32 %v2109_v11, %v2109_v11  ;;  %v2114_v16 = vmul.f32 %v2110_v12, %v2110_v12  ;;  %v2115_v19 = vmul.f32 %v2111_v13, %v2111_v13  ;;  %v2116_v21 = vmul.f32 %v2112_v14, %v2112_v14 }
 0xae8   : > { %v2117_v20 = vadd.f32 %v2114_v16, %v2113_v15 }
 0xaea   : > { %v2118_v22 = vadd.f32 %v2117_v20, %v2115_v19 }
 0xaec   : > { %v2119_v25 = vadd.f32 %v2118_v22, %v2116_v21 }
 0xaee   : > { %2120 = vadd.xlane.f32.xlu1 %v2119_v25 }
 0xb7b   : > { %v2121_v26 = vpop.xlane.xlu1 %2120 }
 0xb7c   : > { %v2122_v27 = vrot.slane %v2121_v26, 4 }
 0xb7e   : > { %v2123_v28 = vadd.f32 %v2122_v27, %v2121_v26 }
 0xb80   : > { %v2124_v29 = vrot.slane %v2123_v28, 2 }
 0xb82   : > { %v2125_v30 = vadd.f32 %v2124_v29, %v2123_v28  ;;  %v3073_v29 = vld [vmem:[%s3946_s26 + $0x158] sm:$0xff] }
 0xb84   : > { %v2126_v61 = vrot.slane %v2125_v30, 1 }
 0xb86   : > { %v2127_v62 = vadd.f32 %v2126_v61, %v2125_v30  ;;  %v3090_v30 = vld [vmem:[%s3946_s26 + $0x180] sm:$0xff] }
 0xb87   : > { %v3074_v61 = vld [vmem:[%s3946_s26 + $0x160] sm:$0xff]  ;;  %3392 = vmatprep.mubr.msk.f32.mxu0 %vm757_vm1, %v3090_v30 }
 0xb88   : > { %3558 = vpush %v2127_v62 }
 0xbb9   : > { %s3559_s25 = spop %3558 }
 0xbba   : > { %v2129_v5 = vstv %s3559_s25 }
 0xbbb   : > { %v2130_v7 = vmul.f32 0.00024414063, %v2129_v5 }
 0xbbd   : > { %v2136_v31 = vadd.f32 1e-12, %v2130_v7  ;;  %v3075_v7 = vld [vmem:[%s3946_s26 + $0x168] sm:$0xff] }
 0xbbf   : > { %3734 = vrsqrt.f32 %v2136_v31  ;;  %v3076_v31 = vld [vmem:[%s3946_s26 + $0x170] sm:$0xff] }
 0xbc9   : > { %v3735_v35 = vpop.eup %3734 }
 0xbca   : > { %v2139_v36 = vmul.f32 %v3735_v35, %v3059_v32  ;;  %v2138_v37 = vmul.f32 %v3735_v35, %v3058_v34  ;;  %v2141_v39 = vmul.f32 %v3735_v35, %v3061_v38  ;;  %v2140_v24 = vmul.f32 %v3735_v35, %v3060_v17  ;;  %v1187_v32 = vld [vmem:[%s3967_s15 + $0x18] sm:$0xff]  ;;  %v1186_v34 = vld [vmem:[%s3967_s15 + $0x10] sm:$0xff]  ;;  %v3043_v38 = vld [vmem:[%s3967_s15 + $0x48] sm:$0xff] }
 0xbcb   : > { %v3077_v35 = vld [vmem:[%s3946_s26 + $0x178] sm:$0xff]  ;;  %v3042_v17 = vld [vmem:[%s3967_s15 + $0x40] sm:$0xff] }
 0xbcc   : > { %2162 = vperm.xlu1 %3609, %v2139_v36   ;;  %2157 = vperm.xlu0 %3608, %v2138_v37   ;;  %v2148_v40 = vmul.f32 %v2139_v36, %v2108_v10  ;;  %v2147_v41 = vmul.f32 %v2138_v37, %v2108_v10  ;;  %v2150_v45 = vmul.f32 %v2141_v39, %v2108_v10  ;;  %v3066_v36 = vld [vmem:[%s3946_s26 + $0x120] sm:$0xff] }
 0xbcd   : > { %v2149_v47 = vmul.f32 %v2140_v24, %v2108_v10  ;;  %v1188_v37 = vld [vmem:[%s3967_s15 + $0x20] sm:$0xff] }
 0xbce   : > { %v2152_v49 = vsub.f32 %v3063_v42, %v2148_v40  ;;  %v2151_v44 = vsub.f32 %v3062_v43, %v2147_v41  ;;  %v2154_v56 = vsub.f32 %v3065_v48, %v2150_v45  ;;  %v3103_v40 = vld [vmem:[%s3967_s15 + $0x68] sm:$0xff]  ;;  %v3102_v41 = vld [vmem:[%s3967_s15 + $0x60] sm:$0xff]  ;;  %v3105_v42 = vld [vmem:[%s3967_s15 + $0x78] sm:$0xff] }
 0xbcf   : > { %v2153_v1 = vsub.f32 %v3064_v53, %v2149_v47  ;;  %v3104_v43 = vld [vmem:[%s3967_s15 + $0x70] sm:$0xff] }
 0xbd0   : > { %2172 = vperm.xlu1 %3609, %v2141_v39   ;;  %2167 = vperm.xlu0 %3608, %v2140_v24   ;;  %v3045_v39 = vld [vmem:[%s3967_s15 + $0x58] sm:$0xff]  ;;  %v3044_v24 = vld [vmem:[%s3967_s15 + $0x50] sm:$0xff] }
 0xbd4   : > { %2186 = vperm.xlu1 %3609, %v2152_v49   ;;  %2181 = vperm.xlu0 %3608, %v2151_v44   ;;  %v3107_v49 = vld [vmem:[%s3967_s15 + $0x88] sm:$0xff]  ;;  %v3106_v44 = vld [vmem:[%s3967_s15 + $0x80] sm:$0xff] }
 0xbd8   : > { %2196 = vperm.xlu1 %3609, %v2154_v56   ;;  %2191 = vperm.xlu0 %3608, %v2153_v1  }
 0xc4b   : > { %v2163_v0 = vpop.permute.xlu1 %2162  ;;  %v2158_v3 = vpop.permute.xlu0 %2157 }
 0xc4c   : > { %v2176_v9 = vmul.f32 %v2163_v0, %v4134_v50  ;;  %v2175_v10 = vmul.f32 %v2158_v3, %v4136_v46 }
 0xc4f   : > { %v2173_v6 = vpop.permute.xlu1 %2172  ;;  %v2168_v8 = vpop.permute.xlu0 %2167 }
 0xc50   : > { %v2178_v15 = vmul.f32 %v2173_v6, %v4142_v2  ;;  %v2177_v16 = vmul.f32 %v2168_v8, %v4140_v57 }
 0xc53   : > { %v2187_v11 = vpop.permute.xlu1 %2186  ;;  %v2182_v12 = vpop.permute.xlu0 %2181 }
 0xc54   : > { %v2200_v13 = vadd.f32 %v2187_v11, %v2176_v9  ;;  %v2199_v14 = vadd.f32 %v2182_v12, %v2175_v10 }
 0xc56   : > { %v3695_v19 = vpack.i.bf16 %v2200_v13, %v3777_v33  ;;  %v3690_v20 = vpack.i.bf16 %v2199_v14, %v3777_v33  ;;  %v3461_v21 = vpack.c.bf16 %v2200_v13, %v2199_v14  ;;  %v3715_v27 = vpack.i.bf16 %v3777_v33, %v2200_v13 }
 0xc57   : > { %v2197_v22 = vpop.permute.xlu1 %2196  ;;  %v2192_v25 = vpop.permute.xlu0 %2191  ;;  %v3710_v28 = vpack.i.bf16 %v3777_v33, %v2199_v14 }
 0xc58   : > { %v2202_v26 = vadd.f32 %v2197_v22, %v2178_v15  ;;  %v2201_v50 = vadd.f32 %v2192_v25, %v2177_v16  ;;  %3696 = vrot.lane.b32.xlu1 %v3695_v19, %s3782_s18  ;;  %3691 = vrot.lane.b32.xlu0 %v3690_v20, %s3782_s18  ;;  %v3067_v22 = vld [vmem:[%s3946_s26 + $0x128] sm:$0xff] }
 0xc59   : > { %3462 = vmatprep.subr.bf16.mxu1 %v3461_v21 }
 0xc5a   : > { %3464 = vmatpush3.bf16.msra.mxu1 %v3461_v21  ;;  %v3705_v46 = vpack.i.bf16 %v2202_v26, %v3777_v33  ;;  %v3700_v57 = vpack.i.bf16 %v2201_v50, %v3777_v33  ;;  %v3465_v2 = vpack.c.bf16 %v2202_v26, %v2201_v50  ;;  %v3725_v62 = vpack.i.bf16 %v3777_v33, %v2202_v26 }
 0xc5b   : > { %v3720_v5 = vpack.i.bf16 %v3777_v33, %v2201_v50  ;;  %v1189_v33 = vld [vmem:[%s3967_s15 + $0x28] sm:$0xff] }
 0xc5c   : > { %3706 = vrot.lane.b32.xlu1 %v3705_v46, %s3782_s18  ;;  %3701 = vrot.lane.b32.xlu0 %v3700_v57, %s3782_s18 }
 0xc5d   : > { %3466 = vmatprep.subr.bf16.mxu1 %v3465_v2 }
 0xc5e   : > { %3468 = vmatpush3.bf16.msra.mxu1 %v3465_v2 }
 0xc60   : > { %3716 = vrot.lane.b32.xlu1 %v3715_v27, %s3783_s21  ;;  %3711 = vrot.lane.b32.xlu0 %v3710_v28, %s3783_s21  ;;  %v3068_v28 = vld [vmem:[%s3946_s26 + $0x130] sm:$0xff] }
 0xc61   : > { %3359 = vmatmul.mubr.msk.f32.vlgmr.msra.gmra.mrb[6].mxu1 %vm757_vm1, %v3073_v29 }
 0xc62   : > { %3361 = vmatprep.mubr.msk.f32.mxu1 %vm757_vm1, %v3074_v61  ;;  %v3069_v61 = vld [vmem:[%s3946_s26 + $0x138] sm:$0xff] }
 0xc64   : > { %3726 = vrot.lane.b32.xlu1 %v3725_v62, %s3783_s21  ;;  %3721 = vrot.lane.b32.xlu0 %v3720_v5, %s3783_s21  ;;  %v3070_v5 = vld [vmem:[%s3946_s26 + $0x140] sm:$0xff] }
 0xc65   : > { %3362 = vmatmul.mubr.msk.f32.gmra.mrb[2].mxu1 %vm757_vm1, %v3075_v7  ;;  %v3071_v7 = vld [vmem:[%s3946_s26 + $0x148] sm:$0xff] }
 0xc66   : > { %3364 = vmatprep.mubr.msk.f32.mxu1 %vm757_vm1, %v3076_v31  ;;  %v3091_v31 = vld [vmem:[%s3946_s26 + $0x188] sm:$0xff] }
 0xc68   : > { %1207 = vperm.xlu1 %3609, %v1187_v32   ;;  %1202 = vperm.xlu0 %3608, %v1186_v34   ;;  %v3092_v32 = vld [vmem:[%s3946_s26 + $0x190] sm:$0xff]  ;;  %v3094_v34 = vld [vmem:[%s3946_s26 + $0x1a0] sm:$0xff] }
 0xc69   : > { %3365 = vmatmul.mubr.msk.f32.gmra.mrb[4].mxu1 %vm757_vm1, %v3077_v35  ;;  %v3093_v35 = vld [vmem:[%s3946_s26 + $0x198] sm:$0xff] }
 0xc6a   : > { %3375 = vmatprep.mubr.msk.f32.mxu1 %vm757_vm1, %v3066_v36  ;;  %v3095_v36 = vld [vmem:[%s3946_s26 + $0x1a8] sm:$0xff]  ;;  %s2947_s26 = sshll.u32 %s4289_s27, 2 }
 0xc6b   : > { %s482_s19 = sadd.s32 %s2948_s17, %s2947_s26 }
 0xc6c   : > { %1217 = vperm.xlu1 %3609, %v1189_v33   ;;  %1212 = vperm.xlu0 %3608, %v1188_v37   ;;  %s2949_s20 = sshll.u32 %s482_s19, 3 }
 0xc6d   : > { %s484_s14 = scalar_lea.vmem %s4275_s8, %s2949_s20 }
 0xc70   : > { %1943 = vperm.xlu1 %3609, %v3043_v38   ;;  %1938 = vperm.xlu0 %3608, %v3042_v17  }
 0xc74   : > { %1953 = vperm.xlu1 %3609, %v3045_v39   ;;  %1948 = vperm.xlu0 %3608, %v3044_v24  }
 0xc78   : > { %2669 = vperm.xlu1 %3609, %v3103_v40   ;;  %2664 = vperm.xlu0 %3608, %v3102_v41  }
 0xc7c   : > { %2679 = vperm.xlu1 %3609, %v3105_v42   ;;  %2674 = vperm.xlu0 %3608, %v3104_v43  }
 0xc80   : > { %2689 = vperm.xlu1 %3609, %v3107_v49   ;;  %2684 = vperm.xlu0 %3608, %v3106_v44  }
 0xcca   : > { %v3697_v45 = vpop.permute.xlu1 %3696  ;;  %v3692_v47 = vpop.permute.xlu0 %3691 }
 0xccb   : > { %v3699_v48 = vunpack.i.h.bf16 %v3697_v45  ;;  %v3698_v53 = vunpack.i.l.bf16 %v3697_v45  ;;  %v3694_v56 = vunpack.i.h.bf16 %v3692_v47  ;;  %v3693_v1 = vunpack.i.l.bf16 %v3692_v47 }
 0xccd   : > { %v2367_v58 = vsel %vm2366_vm6, %v3693_v1, %v3694_v56  ;;  %v2368_v59 = vsel %vm2366_vm6, %v3698_v53, %v3699_v48 }
 0xcce   : > { %v3707_v60 = vpop.permute.xlu1 %3706  ;;  %v3702_v63 = vpop.permute.xlu0 %3701  ;;  %v3469_v0 = vpack.c.bf16 %v2368_v59, %v2367_v58 }
 0xccf   : > { %v3709_v3 = vunpack.i.h.bf16 %v3707_v60  ;;  %v3708_v4 = vunpack.i.l.bf16 %v3707_v60  ;;  %v3704_v6 = vunpack.i.h.bf16 %v3702_v63  ;;  %v3703_v8 = vunpack.i.l.bf16 %v3702_v63 }
 0xcd0   : > { %3470 = vmatprep.subr.bf16.mxu1 %v3469_v0 }
 0xcd1   : > { %3472 = vmatpush3.bf16.msra.mxu1 %v3469_v0  ;;  %v2369_v9 = vsel %vm2366_vm6, %v3703_v8, %v3704_v6  ;;  %v2370_v10 = vsel %vm2366_vm6, %v3708_v4, %v3709_v3 }
 0xcd2   : > { %v3717_v11 = vpop.permute.xlu1 %3716  ;;  %v3712_v12 = vpop.permute.xlu0 %3711  ;;  %v3473_v13 = vpack.c.bf16 %v2370_v10, %v2369_v9 }
 0xcd3   : > { %v3719_v14 = vunpack.i.h.bf16 %v3717_v11  ;;  %v3718_v15 = vunpack.i.l.bf16 %v3717_v11  ;;  %v3714_v16 = vunpack.i.h.bf16 %v3712_v12  ;;  %v3713_v19 = vunpack.i.l.bf16 %v3712_v12 }
 0xcd4   : > { %3474 = vmatprep.subr.bf16.mxu1 %v3473_v13 }
 0xcd5   : > { %v2529_v20 = vsel %vm2527_vm7, %v3718_v15, %v3719_v14  ;;  %v2528_v21 = vsel %vm2527_vm7, %v3713_v19, %v3714_v16  ;;  %3476 = vmatpush3.bf16.msra.mxu1 %v3473_v13 }
 0xcd6   : > { %v3477_v25 = vpack.c.bf16 %v2529_v20, %v2528_v21  ;;  %v3727_v26 = vpop.permute.xlu1 %3726  ;;  %v3722_v50 = vpop.permute.xlu0 %3721 }
 0xcd7   : > { %v3729_v46 = vunpack.i.h.bf16 %v3727_v26  ;;  %v3728_v57 = vunpack.i.l.bf16 %v3727_v26  ;;  %v3724_v2 = vunpack.i.h.bf16 %v3722_v50  ;;  %v3723_v27 = vunpack.i.l.bf16 %v3722_v50 }
 0xcd8   : > { %3376 = vmatmul.mubr.msk.f32.vlgmr.msra.gmra.mrb[6].mxu1 %vm757_vm1, %v3067_v22  ;;  %3478 = vmatprep.subr.bf16.mxu0 %v3477_v25 }
 0xcd9   : > { %v2531_v29 = vsel %vm2527_vm7, %v3728_v57, %v3729_v46  ;;  %v2530_v30 = vsel %vm2527_vm7, %v3723_v27, %v3724_v2  ;;  %3485 = vmatprep.subr.bf16.mxu1 %v3477_v25  ;;  %3480 = vmatpush3.bf16.msra.mxu0 %v3477_v25 }
 0xcda   : > { %v3481_v62 = vpack.c.bf16 %v2531_v29, %v2530_v30  ;;  %3487 = vmatpush3.bf16.msra.mxu1 %v3477_v25  ;;  %3378 = vmatprep.mubr.msk.f32.mxu1 %vm757_vm1, %v3068_v28 }
 0xcdc   : > { %3379 = vmatmul.mubr.msk.f32.gmra.mrb[2].mxu1 %vm757_vm1, %v3069_v61  ;;  %3482 = vmatprep.subr.bf16.mxu0 %v3481_v62 }
 0xcdd   : > { %3486 = vmatprep.subr.bf16.mxu1 %v3481_v62  ;;  %3484 = vmatpush3.bf16.msra.mxu0 %v3481_v62 }
 0xcde   : > { %3488 = vmatpush3.bf16.msra.mxu1 %v3481_v62  ;;  %3381 = vmatprep.mubr.msk.f32.mxu1 %vm757_vm1, %v3070_v5 }
 0xce0   : > { %3382 = vmatmul.mubr.msk.f32.gmra.mrb[4].mxu1 %vm757_vm1, %v3071_v7  ;;  %3393 = vmatmul.mubr.msk.f32.vlgmr.msra.gmra.mrb[18].mxu0 %vm757_vm1, %v3091_v31 }
 0xce1   : > { %3395 = vmatprep.mubr.msk.f32.mxu0 %vm757_vm1, %v3092_v32  ;;  %3398 = vmatprep.mubr.msk.f32.mxu1 %vm757_vm1, %v3094_v34 }
 0xce4   : > { %3396 = vmatmul.mubr.msk.f32.gmra.mrb[20].mxu0 %vm757_vm1, %v3093_v35 }
 0xce7   : > { %v1208_v33 = vpop.permute.xlu1 %1207  ;;  %v1203_v37 = vpop.permute.xlu0 %1202 }
 0xce8   : > { %3399 = vmatmul.mubr.msk.f32.vlgmr.msra.gmra.mrb[4].mxu1 %vm757_vm1, %v3095_v36  ;;  %v3489_v42 = vadd.f32 %v4024_v51, %v1208_v33  ;;  %v3494_v44 = vadd.f32 %v1203_v37, %v4026_v52 }
 0xceb   : > { %v1218_v38 = vpop.permute.xlu1 %1217  ;;  %v1213_v17 = vpop.permute.xlu0 %1212 }
 0xcec   : > { %v3499_v8 = vadd.f32 %v4030_v54, %v1218_v38  ;;  %v3503_v13 = vadd.f32 %v1213_v17, %v4032_v55 }
 0xcef   : > { %v1944_v39 = vpop.permute.xlu1 %1943  ;;  %v1939_v24 = vpop.permute.xlu0 %1938 }
 0xcf0   : > { %v3490_v45 = vadd.f32 %v3489_v42, %v1944_v39  ;;  %v3495_v47 = vadd.f32 %v3494_v44, %v1939_v24 }
 0xcf3   : > { %v1954_v40 = vpop.permute.xlu1 %1953  ;;  %v1949_v43 = vpop.permute.xlu0 %1948 }
 0xcf4   : > { %v3500_v16 = vadd.f32 %v3499_v8, %v1954_v40  ;;  %v3504_v20 = vadd.f32 %v3503_v13, %v1949_v43 }
 0xcf7   : > { %v2670_v1 = vpop.permute.xlu1 %2669  ;;  %v2665_v59 = vpop.permute.xlu0 %2664 }
 0xcfb   : > { %v2680_v52 = vpop.permute.xlu1 %2679  ;;  %v2675_v9 = vpop.permute.xlu0 %2674 }
 0xcff   : > { %v2690_v25 = vpop.permute.xlu1 %2689  ;;  %v2685_v26 = vpop.permute.xlu0 %2684 }
 0xdab   : > { %v3377_v41 = vpop.f32.mrb[6].mxu1 }
 0xdac   : > { %v2459_v49 = vpop.f32.mrb[7].mxu1 }
 0xdaf   : > { %v3380_v48 = vpop.f32.mrb[2].mxu1 }
 0xdb0   : > { %v3491_v53 = vadd.f32 %v3490_v45, %v3380_v48  ;;  %v2469_v56 = vpop.f32.mrb[3].mxu1 }
 0xdb1   : > { %v3496_v58 = vadd.f32 %v3495_v47, %v2469_v56 }
 0xdb3   : > { %v3394_v60 = vpop.f32.mrb[18].mxu0 }
 0xdb4   : > { %v3507_v63 = vadd.f32 %v3394_v60, %v3377_v41  ;;  %v2620_v0 = vpop.f32.mrb[19].mxu0 }
 0xdb5   : > { %v3508_v51 = vadd.f32 %v2620_v0, %v2459_v49 }
 0xdb6   : > { %v2693_v3 = vadd.f32 %v3507_v63, %v2670_v1 }
 0xdb7   : > { %v2692_v4 = vadd.f32 %v3508_v51, %v2665_v59  ;;  %v3397_v6 = vpop.f32.mrb[20].mxu0 }
 0xdb8   : > { %v2699_v10 = vadd.f32 %v2693_v3, %v4121_v18  ;;  %v3492_v11 = vadd.f32 %v3491_v53, %v3397_v6  ;;  %v2630_v12 = vpop.f32.mrb[21].mxu0 }
 0xdb9   : > { %v2698_v14 = vadd.f32 %v2692_v4, %v4124_v23  ;;  %v3497_v15 = vadd.f32 %v3496_v58, %v2630_v12 }
 0xdba   : > { %2705 = vst [vmem:[%s475_s24 + $0x8] sm:$0xff] %v2699_v10  ;;  %v3493_v19 = vadd.f32 %v3492_v11, %v2680_v52 }
 0xdbb   : > { %2704 = vst [vmem:[%s475_s24] sm:$0xff] %v2698_v14  ;;  %v3498_v54 = vadd.f32 %v3497_v15, %v2675_v9  ;;  %v3400_v21 = vpop.f32.mrb[4].mxu1 }
 0xdbc   : > { %2707 = vst [vmem:[%s484_s14 + $0x8] sm:$0xff] %v3493_v19  ;;  %v3501_v18 = vadd.f32 %v3500_v16, %v3400_v21  ;;  %v2640_v22 = vpop.f32.mrb[5].mxu1 }
 0xdbd   : > { %2706 = vst [vmem:[%s484_s14] sm:$0xff] %v3498_v54  ;;  %v3505_v55 = vadd.f32 %v3504_v20, %v2640_v22 }
 0xdbe   : > { %v3502_v23 = vadd.f32 %v3501_v18, %v2690_v25 }
 0xdbf   : > { %v3506_v50 = vadd.f32 %v3505_v55, %v2685_v26 }
 0xdc0   : > { %2709 = vst [vmem:[%s484_s14 + $0x18] sm:$0xff] %v3502_v23 }
 0xdc1   : > { %2708 = vst [vmem:[%s484_s14 + $0x10] sm:$0xff] %v3506_v50 }
 0xdc2 PF: > { %s19_s9 = sadd.s32 1, %s3774_s9   ;;  %s4276_s27 = smov %s3766_s29 }
 0xdc3   : > { %p16_p7 = scmp.ge.s32.totalorder %s19_s9, 6   ;;  %s4277_s28 = smov %s3770_s30 }
 0xdc4   : > { %s4278_s29 = smov %s4281_s10  ;;  %s4279_s30 = smov %s4285_s11 }
 0xdc5   :  { %18 = sbr.rel (!%p16_p7) target bundleno = 3 (0x3), region = 126 }

</bundles_post_ra>
